<compile_context>
chip_gen: v7x
topology: tpu7x:2x2x1
jax: 0.10.0
libtpu: 0.0.40
codegen_flags: <defaults>
</compile_context>

<pallas_src>
import jax
import jax.numpy as jnp
from jax.experimental import pallas as pl
from jax.experimental.pallas import tpu as pltpu  # noqa: F401  (kept for TPU backend import)

# ----------------------------- config ------------------------------------
D_MODEL = 32
NHEAD = 4
HEAD_DIM = D_MODEL // NHEAD
DIM_FF = 64
NUM_LAYERS = 2
SEQ = 8
BATCH = 2
BS = BATCH * SEQ
LN_EPS = 1e-5               # nn.LayerNorm default
# dropout is a no-op in eval mode -> not implemented
# TODO(synk): attn_mask / src_key_padding_mask (None in this usage) are not implemented.


# --------------------------- kernel helpers -------------------------------
def _layernorm(x, w, b):
    mean = jnp.mean(x, axis=-1, keepdims=True)
    var = jnp.mean((x - mean) ** 2, axis=-1, keepdims=True)
    return (x - mean) * jax.lax.rsqrt(var + LN_EPS) * w + b


def _encoder_layer(x, pos, w_qkv, wo, w1, w2, vw, v32):
    """One post-norm DETR encoder layer on a (B*S, D) activation value."""
    # packed bias / LayerNorm vectors, sliced as register values
    b_qkv = vw[0:1, :]                         # (1, 3D)  Q third pre-scaled
    b1    = vw[1:2, 0:DIM_FF]                  # (1, FF)
    bo    = v32[0:1, :]
    ln1w  = v32[1:2, :]
    ln1b  = v32[2:3, :]
    b2    = v32[3:4, :]
    ln2w  = v32[4:5, :]
    ln2b  = v32[5:6, :]

    # --- fused self-attention projections ---------------------------------
    # one (2*BS, D) @ (D, 3D) matmul; q/k come from the (x+pos) rows,
    # v from the plain-x rows (pos is added to q/k only, value = src).
    qkv_in = jnp.concatenate([x + pos, x], axis=0)                          # (2BS, D)
    qkv = jnp.dot(qkv_in, w_qkv, preferred_element_type=jnp.float32) + b_qkv
    q = qkv[0:BS, 0:D_MODEL]                                                # pre-scaled
    k = qkv[0:BS, D_MODEL:2 * D_MODEL]
    v = qkv[BS:2 * BS, 2 * D_MODEL:3 * D_MODEL]

    # --- per-head attention, output projection accumulated in-value -------
    attn_out = bo                                                           # (1, D) broadcasts
    for h in range(NHEAD):                     # static, NHEAD small
        lo, hi = h * HEAD_DIM, (h + 1) * HEAD_DIM
        qh = q[:, lo:hi].reshape(BATCH, SEQ, HEAD_DIM)
        kh = k[:, lo:hi].reshape(BATCH, SEQ, HEAD_DIM)
        vh = v[:, lo:hi].reshape(BATCH, SEQ, HEAD_DIM)
        s = jnp.einsum('bqd,bkd->bqk', qh, kh,
                       preferred_element_type=jnp.float32)                  # (B,S,S)
        s = s - jnp.max(s, axis=-1, keepdims=True)
        p = jnp.exp(s)
        p = p * pl.reciprocal(jnp.sum(p, axis=-1, keepdims=True), approx=True)
        oh = jnp.einsum('bqk,bkd->bqd', p, vh,
                        preferred_element_type=jnp.float32)                 # (B,S,hd)
        attn_out = attn_out + jnp.dot(oh.reshape(BS, HEAD_DIM), wo[lo:hi, :],
                                      preferred_element_type=jnp.float32)

    x = _layernorm(x + attn_out, ln1w, ln1b)

    # --- feed forward ------------------------------------------------------
    h1 = jnp.maximum(jnp.dot(x, w1, preferred_element_type=jnp.float32) + b1, 0.0)
    h2 = jnp.dot(h1, w2, preferred_element_type=jnp.float32) + b2
    return _layernorm(x + h2, ln2w, ln2b)


# --------------------------- fused kernel ----------------------------------
def fused_encoder_kernel(src_ref, pos_ref, w_qkv_ref, wo_ref, w1_ref, w2_ref,
                         vw_ref, v32_ref, final_ln_ref, out_ref):
    x = src_ref[...]                    # (B*S, D)
    pos = pos_ref[...]
    for l in range(NUM_LAYERS):         # static unroll; each ref[l] is one whole-slab load
        x = _encoder_layer(x, pos,
                           w_qkv_ref[l], wo_ref[l], w1_ref[l], w2_ref[l],
                           vw_ref[l], v32_ref[l])
    # final self.norm = LayerNorm(d_model)
    fl = final_ln_ref[...]
    out_ref[...] = _layernorm(x, fl[0:1, :], fl[1:2, :])


# ----------------------------- wrapper -------------------------------------
@jax.jit
def transformer_encoder(src_sbd, pos_sbd, stacked_params, final_ln):
    """Matches TransformerEncoder.forward(src, mask=None,
    src_key_padding_mask=None, pos=pos).  src/pos in PyTorch (S, B, D)
    layout; returns (S, B, D)."""
    S, B, D = src_sbd.shape
    x = jnp.transpose(src_sbd, (1, 0, 2)).reshape(B * S, D)
    p = jnp.transpose(pos_sbd, (1, 0, 2)).reshape(B * S, D)

    out = pl.pallas_call(
        fused_encoder_kernel,
        out_shape=jax.ShapeDtypeStruct((B * S, D), jnp.float32),
    )(x, p, *stacked_params, final_ln)
    # TODO(synk): on v7x a size-2 "parallel" batch grid could use both
    # TensorCores, but per-core work here is far below grid-step overhead.
    return jnp.transpose(out.reshape(B, S, D), (1, 0, 2))


# ---------------------------- param init -----------------------------------
def init_layer_params(key):
    ks = jax.random.split(key, 6)
    std = 0.02

    def w(k, shape):
        return std * jax.random.normal(k, shape, jnp.float32)

    scale = 1.0 / (HEAD_DIM ** 0.5)
    # weights stored pre-transposed so the kernel does x @ W (torch: x @ W.T)
    wq = w(ks[0], (D_MODEL, D_MODEL))
    wk = w(ks[1], (D_MODEL, D_MODEL))
    wv = w(ks[2], (D_MODEL, D_MODEL))
    wo = w(ks[3], (D_MODEL, D_MODEL))
    w1 = w(ks[4], (D_MODEL, DIM_FF))
    w2 = w(ks[5], (DIM_FF, D_MODEL))

    bq = jnp.zeros((D_MODEL,), jnp.float32)
    bk = jnp.zeros((D_MODEL,), jnp.float32)
    bv = jnp.zeros((D_MODEL,), jnp.float32)
    bo = jnp.zeros((D_MODEL,), jnp.float32)
    b1 = jnp.zeros((DIM_FF,), jnp.float32)
    b2 = jnp.zeros((D_MODEL,), jnp.float32)
    ln1w = jnp.ones((D_MODEL,), jnp.float32)
    ln1b = jnp.zeros((D_MODEL,), jnp.float32)
    ln2w = jnp.ones((D_MODEL,), jnp.float32)
    ln2b = jnp.zeros((D_MODEL,), jnp.float32)

    # ---- packing (one-time, wrapper-side) ----
    # fused QKV projection with 1/sqrt(head_dim) folded into the Q third
    w_qkv = jnp.concatenate([wq * scale, wk, wv], axis=1)            # (D, 3D)
    b_qkv = jnp.concatenate([bq * scale, bk, bv])                    # (3D,)
    width = 3 * D_MODEL
    vecw = jnp.stack([b_qkv,
                      jnp.pad(b1, (0, width - DIM_FF))])             # (2, 3D)
    pad = jnp.zeros((D_MODEL,), jnp.float32)
    vec32 = jnp.stack([bo, ln1w, ln1b, b2, ln2w, ln2b, pad, pad])    # (8, D)
    return {"w_qkv": w_qkv, "wo": wo, "w1": w1, "w2": w2,
            "vecw": vecw, "vec32": vec32}


def stack_layer_params(layer_params):
    """Stack per-layer slabs along a leading layer axis (fewer kernel operands)."""
    keys = ("w_qkv", "wo", "w1", "w2", "vecw", "vec32")
    return tuple(jnp.stack([lp[k] for lp in layer_params], axis=0) for k in keys)


# ------------------------------- main ---------------------------------------
if __name__ == "__main__":
    key = jax.random.PRNGKey(0)
    k_src, k_pos, k_params = jax.random.split(key, 3)

    # PyTorch MultiheadAttention layout: (S, B, D)
    src = jax.random.normal(k_src, (SEQ, BATCH, D_MODEL), jnp.float32)
    pos = jax.random.normal(k_pos, (SEQ, BATCH, D_MODEL), jnp.float32)

    layer_keys = jax.random.split(k_params, NUM_LAYERS)
    layer_params = [init_layer_params(k) for k in layer_keys]
    stacked_params = stack_layer_params(layer_params)
    final_ln = jnp.stack([jnp.ones((D_MODEL,), jnp.float32),
                          jnp.zeros((D_MODEL,), jnp.float32)])       # rows: [weight, bias]

    out = transformer_encoder(src, pos, stacked_params, final_ln)
    out = jax.block_until_ready(out)
    assert out.shape == (SEQ, BATCH, D_MODEL)
    assert bool(jnp.all(jnp.isfinite(out)))
    print("KERNEL_OK")
</pallas_src>

<mosaic_0001>
module attributes {stable_mosaic.version = 11 : i64} {
  func.func @fused_encoder_kernel(%arg0: memref<16x32xf32, #tpu.memory_space<vmem>>, %arg1: memref<16x32xf32, #tpu.memory_space<vmem>>, %arg2: memref<2x32x96xf32, #tpu.memory_space<vmem>>, %arg3: memref<2x32x32xf32, #tpu.memory_space<vmem>>, %arg4: memref<2x32x64xf32, #tpu.memory_space<vmem>>, %arg5: memref<2x64x32xf32, #tpu.memory_space<vmem>>, %arg6: memref<2x2x96xf32, #tpu.memory_space<vmem>>, %arg7: memref<2x8x32xf32, #tpu.memory_space<vmem>>, %arg8: memref<2x32xf32, #tpu.memory_space<vmem>>, %arg9: memref<16x32xf32, #tpu.memory_space<vmem>>) attributes {dimension_semantics = [], scalar_prefetch = 0 : i64, scratch_operands = 0 : i64, tpu.core_type = #tpu.core_type<tc>} {
    %c0 = arith.constant 0 : index
    %c0_0 = arith.constant 0 : index
    %0 = vector.load %arg0[%c0, %c0_0] : memref<16x32xf32, #tpu.memory_space<vmem>>, vector<16x32xf32>
    %c0_1 = arith.constant 0 : index
    %c0_2 = arith.constant 0 : index
    %1 = vector.load %arg1[%c0_1, %c0_2] : memref<16x32xf32, #tpu.memory_space<vmem>>, vector<16x32xf32>
    %c0_3 = arith.constant 0 : index
    %c0_4 = arith.constant 0 : index
    %c0_5 = arith.constant 0 : index
    %2 = vector.load %arg2[%c0_3, %c0_4, %c0_5] : memref<2x32x96xf32, #tpu.memory_space<vmem>>, vector<1x32x96xf32>
    %3 = vector.shape_cast %2 : vector<1x32x96xf32> to vector<32x96xf32>
    %c0_6 = arith.constant 0 : index
    %c0_7 = arith.constant 0 : index
    %c0_8 = arith.constant 0 : index
    %4 = vector.load %arg3[%c0_6, %c0_7, %c0_8] : memref<2x32x32xf32, #tpu.memory_space<vmem>>, vector<1x32x32xf32>
    %5 = vector.shape_cast %4 : vector<1x32x32xf32> to vector<32x32xf32>
    %c0_9 = arith.constant 0 : index
    %c0_10 = arith.constant 0 : index
    %c0_11 = arith.constant 0 : index
    %6 = vector.load %arg4[%c0_9, %c0_10, %c0_11] : memref<2x32x64xf32, #tpu.memory_space<vmem>>, vector<1x32x64xf32>
    %7 = vector.shape_cast %6 : vector<1x32x64xf32> to vector<32x64xf32>
    %c0_12 = arith.constant 0 : index
    %c0_13 = arith.constant 0 : index
    %c0_14 = arith.constant 0 : index
    %8 = vector.load %arg5[%c0_12, %c0_13, %c0_14] : memref<2x64x32xf32, #tpu.memory_space<vmem>>, vector<1x64x32xf32>
    %9 = vector.shape_cast %8 : vector<1x64x32xf32> to vector<64x32xf32>
    %c0_15 = arith.constant 0 : index
    %c0_16 = arith.constant 0 : index
    %c0_17 = arith.constant 0 : index
    %10 = vector.load %arg6[%c0_15, %c0_16, %c0_17] : memref<2x2x96xf32, #tpu.memory_space<vmem>>, vector<1x2x96xf32>
    %11 = vector.shape_cast %10 : vector<1x2x96xf32> to vector<2x96xf32>
    %c0_18 = arith.constant 0 : index
    %c0_19 = arith.constant 0 : index
    %c0_20 = arith.constant 0 : index
    %12 = vector.load %arg7[%c0_18, %c0_19, %c0_20] : memref<2x8x32xf32, #tpu.memory_space<vmem>>, vector<1x8x32xf32>
    %13 = vector.shape_cast %12 : vector<1x8x32xf32> to vector<8x32xf32>
    %14 = vector.extract_strided_slice %11 {offsets = [0, 0], sizes = [1, 96], strides = [1, 1]} : vector<2x96xf32> to vector<1x96xf32>
    %15 = vector.extract_strided_slice %11 {offsets = [1, 0], sizes = [1, 64], strides = [1, 1]} : vector<2x96xf32> to vector<1x64xf32>
    %16 = vector.extract_strided_slice %13 {offsets = [0, 0], sizes = [1, 32], strides = [1, 1]} : vector<8x32xf32> to vector<1x32xf32>
    %17 = vector.extract_strided_slice %13 {offsets = [1, 0], sizes = [1, 32], strides = [1, 1]} : vector<8x32xf32> to vector<1x32xf32>
    %18 = vector.extract_strided_slice %13 {offsets = [2, 0], sizes = [1, 32], strides = [1, 1]} : vector<8x32xf32> to vector<1x32xf32>
    %19 = vector.extract_strided_slice %13 {offsets = [3, 0], sizes = [1, 32], strides = [1, 1]} : vector<8x32xf32> to vector<1x32xf32>
    %20 = vector.extract_strided_slice %13 {offsets = [4, 0], sizes = [1, 32], strides = [1, 1]} : vector<8x32xf32> to vector<1x32xf32>
    %21 = vector.extract_strided_slice %13 {offsets = [5, 0], sizes = [1, 32], strides = [1, 1]} : vector<8x32xf32> to vector<1x32xf32>
    %22 = arith.addf %0, %1 : vector<16x32xf32>
    %23 = tpu.concatenate %22, %0 in 0 : vector<16x32xf32>, vector<16x32xf32> -> vector<32x32xf32>
    %cst = arith.constant dense<0.000000e+00> : vector<32x96xf32>
    %24 = tpu.matmul %23, %3, %cst {dimension_numbers = #tpu.dot_dimension_numbers<[1], [0], [0], [1], [0, 0, 1, 1], [], []>} : vector<32x32xf32>, vector<32x96xf32>, vector<32x96xf32> -> vector<32x96xf32>
    %25 = vector.broadcast %14 : vector<1x96xf32> to vector<32x96xf32>
    %26 = arith.addf %24, %25 : vector<32x96xf32>
    %27 = vector.extract_strided_slice %26 {offsets = [0, 0], sizes = [16, 32], strides = [1, 1]} : vector<32x96xf32> to vector<16x32xf32>
    %28 = vector.extract_strided_slice %26 {offsets = [0, 32], sizes = [16, 32], strides = [1, 1]} : vector<32x96xf32> to vector<16x32xf32>
    %29 = vector.extract_strided_slice %26 {offsets = [16, 64], sizes = [16, 32], strides = [1, 1]} : vector<32x96xf32> to vector<16x32xf32>
    %30 = vector.extract_strided_slice %27 {offsets = [0, 0], sizes = [16, 8], strides = [1, 1]} : vector<16x32xf32> to vector<16x8xf32>
    %31 = vector.shape_cast %30 : vector<16x8xf32> to vector<2x8x8xf32>
    %32 = vector.extract_strided_slice %28 {offsets = [0, 0], sizes = [16, 8], strides = [1, 1]} : vector<16x32xf32> to vector<16x8xf32>
    %33 = vector.shape_cast %32 : vector<16x8xf32> to vector<2x8x8xf32>
    %34 = vector.extract_strided_slice %29 {offsets = [0, 0], sizes = [16, 8], strides = [1, 1]} : vector<16x32xf32> to vector<16x8xf32>
    %35 = vector.shape_cast %34 : vector<16x8xf32> to vector<2x8x8xf32>
    "tpu.trace_start"() <{level = 10 : i32, message = "bqd,bkd->bqk"}> : () -> ()
    %cst_21 = arith.constant dense<0.000000e+00> : vector<2x8x8xf32>
    %36 = tpu.matmul %31, %33, %cst_21 {dimension_numbers = #tpu.dot_dimension_numbers<[2], [2], [1], [1], [0, 0, 0, 1, 1, 1], [0], [0]>} : vector<2x8x8xf32>, vector<2x8x8xf32>, vector<2x8x8xf32> -> vector<2x8x8xf32>
    "tpu.trace_stop"() : () -> ()
    %cst_22 = arith.constant dense<0xFF800000> : vector<2x8xf32>
    %37 = vector.multi_reduction <maximumf>, %36, %cst_22 [2] : vector<2x8x8xf32> to vector<2x8xf32>
    %38 = vector.shape_cast %37 : vector<2x8xf32> to vector<2x8x1xf32>
    %39 = vector.broadcast %38 : vector<2x8x1xf32> to vector<2x8x8xf32>
    %40 = arith.subf %36, %39 : vector<2x8x8xf32>
    %41 = math.exp %40 : vector<2x8x8xf32>
    %cst_23 = arith.constant dense<0.000000e+00> : vector<2x8xf32>
    %42 = vector.multi_reduction <add>, %41, %cst_23 [2] : vector<2x8x8xf32> to vector<2x8xf32>
    %43 = vector.shape_cast %42 : vector<2x8xf32> to vector<2x8x1xf32>
    %44 = tpu.reciprocal %43 {approx = true} : vector<2x8x1xf32> -> vector<2x8x1xf32>
    %45 = vector.broadcast %44 : vector<2x8x1xf32> to vector<2x8x8xf32>
    %46 = arith.mulf %41, %45 : vector<2x8x8xf32>
    "tpu.trace_start"() <{level = 10 : i32, message = "bqk,bkd->bqd"}> : () -> ()
    %cst_24 = arith.constant dense<0.000000e+00> : vector<2x8x8xf32>
    %47 = tpu.matmul %46, %35, %cst_24 {dimension_numbers = #tpu.dot_dimension_numbers<[2], [1], [1], [2], [0, 0, 0, 1, 1, 2], [0], [0]>} : vector<2x8x8xf32>, vector<2x8x8xf32>, vector<2x8x8xf32> -> vector<2x8x8xf32>
    "tpu.trace_stop"() : () -> ()
    %48 = vector.shape_cast %47 : vector<2x8x8xf32> to vector<16x8xf32>
    %49 = vector.extract_strided_slice %5 {offsets = [0, 0], sizes = [8, 32], strides = [1, 1]} : vector<32x32xf32> to vector<8x32xf32>
    %cst_25 = arith.constant dense<0.000000e+00> : vector<16x32xf32>
    %50 = tpu.matmul %48, %49, %cst_25 {dimension_numbers = #tpu.dot_dimension_numbers<[1], [0], [0], [1], [0, 0, 1, 1], [], []>} : vector<16x8xf32>, vector<8x32xf32>, vector<16x32xf32> -> vector<16x32xf32>
    %51 = vector.broadcast %16 : vector<1x32xf32> to vector<16x32xf32>
    %52 = arith.addf %51, %50 : vector<16x32xf32>
    %53 = vector.extract_strided_slice %27 {offsets = [0, 8], sizes = [16, 8], strides = [1, 1]} : vector<16x32xf32> to vector<16x8xf32>
    %54 = vector.shape_cast %53 : vector<16x8xf32> to vector<2x8x8xf32>
    %55 = vector.extract_strided_slice %28 {offsets = [0, 8], sizes = [16, 8], strides = [1, 1]} : vector<16x32xf32> to vector<16x8xf32>
    %56 = vector.shape_cast %55 : vector<16x8xf32> to vector<2x8x8xf32>
    %57 = vector.extract_strided_slice %29 {offsets = [0, 8], sizes = [16, 8], strides = [1, 1]} : vector<16x32xf32> to vector<16x8xf32>
    %58 = vector.shape_cast %57 : vector<16x8xf32> to vector<2x8x8xf32>
    "tpu.trace_start"() <{level = 10 : i32, message = "bqd,bkd->bqk"}> : () -> ()
    %cst_26 = arith.constant dense<0.000000e+00> : vector<2x8x8xf32>
    %59 = tpu.matmul %54, %56, %cst_26 {dimension_numbers = #tpu.dot_dimension_numbers<[2], [2], [1], [1], [0, 0, 0, 1, 1, 1], [0], [0]>} : vector<2x8x8xf32>, vector<2x8x8xf32>, vector<2x8x8xf32> -> vector<2x8x8xf32>
    "tpu.trace_stop"() : () -> ()
    %cst_27 = arith.constant dense<0xFF800000> : vector<2x8xf32>
    %60 = vector.multi_reduction <maximumf>, %59, %cst_27 [2] : vector<2x8x8xf32> to vector<2x8xf32>
    %61 = vector.shape_cast %60 : vector<2x8xf32> to vector<2x8x1xf32>
    %62 = vector.broadcast %61 : vector<2x8x1xf32> to vector<2x8x8xf32>
    %63 = arith.subf %59, %62 : vector<2x8x8xf32>
    %64 = math.exp %63 : vector<2x8x8xf32>
    %cst_28 = arith.constant dense<0.000000e+00> : vector<2x8xf32>
    %65 = vector.multi_reduction <add>, %64, %cst_28 [2] : vector<2x8x8xf32> to vector<2x8xf32>
    %66 = vector.shape_cast %65 : vector<2x8xf32> to vector<2x8x1xf32>
    %67 = tpu.reciprocal %66 {approx = true} : vector<2x8x1xf32> -> vector<2x8x1xf32>
    %68 = vector.broadcast %67 : vector<2x8x1xf32> to vector<2x8x8xf32>
    %69 = arith.mulf %64, %68 : vector<2x8x8xf32>
    "tpu.trace_start"() <{level = 10 : i32, message = "bqk,bkd->bqd"}> : () -> ()
    %cst_29 = arith.constant dense<0.000000e+00> : vector<2x8x8xf32>
    %70 = tpu.matmul %69, %58, %cst_29 {dimension_numbers = #tpu.dot_dimension_numbers<[2], [1], [1], [2], [0, 0, 0, 1, 1, 2], [0], [0]>} : vector<2x8x8xf32>, vector<2x8x8xf32>, vector<2x8x8xf32> -> vector<2x8x8xf32>
    "tpu.trace_stop"() : () -> ()
    %71 = vector.shape_cast %70 : vector<2x8x8xf32> to vector<16x8xf32>
    %72 = vector.extract_strided_slice %5 {offsets = [8, 0], sizes = [8, 32], strides = [1, 1]} : vector<32x32xf32> to vector<8x32xf32>
    %cst_30 = arith.constant dense<0.000000e+00> : vector<16x32xf32>
    %73 = tpu.matmul %71, %72, %cst_30 {dimension_numbers = #tpu.dot_dimension_numbers<[1], [0], [0], [1], [0, 0, 1, 1], [], []>} : vector<16x8xf32>, vector<8x32xf32>, vector<16x32xf32> -> vector<16x32xf32>
    %74 = arith.addf %52, %73 : vector<16x32xf32>
    %75 = vector.extract_strided_slice %27 {offsets = [0, 16], sizes = [16, 8], strides = [1, 1]} : vector<16x32xf32> to vector<16x8xf32>
    %76 = vector.shape_cast %75 : vector<16x8xf32> to vector<2x8x8xf32>
    %77 = vector.extract_strided_slice %28 {offsets = [0, 16], sizes = [16, 8], strides = [1, 1]} : vector<16x32xf32> to vector<16x8xf32>
    %78 = vector.shape_cast %77 : vector<16x8xf32> to vector<2x8x8xf32>
    %79 = vector.extract_strided_slice %29 {offsets = [0, 16], sizes = [16, 8], strides = [1, 1]} : vector<16x32xf32> to vector<16x8xf32>
    %80 = vector.shape_cast %79 : vector<16x8xf32> to vector<2x8x8xf32>
    "tpu.trace_start"() <{level = 10 : i32, message = "bqd,bkd->bqk"}> : () -> ()
    %cst_31 = arith.constant dense<0.000000e+00> : vector<2x8x8xf32>
    %81 = tpu.matmul %76, %78, %cst_31 {dimension_numbers = #tpu.dot_dimension_numbers<[2], [2], [1], [1], [0, 0, 0, 1, 1, 1], [0], [0]>} : vector<2x8x8xf32>, vector<2x8x8xf32>, vector<2x8x8xf32> -> vector<2x8x8xf32>
    "tpu.trace_stop"() : () -> ()
    %cst_32 = arith.constant dense<0xFF800000> : vector<2x8xf32>
    %82 = vector.multi_reduction <maximumf>, %81, %cst_32 [2] : vector<2x8x8xf32> to vector<2x8xf32>
    %83 = vector.shape_cast %82 : vector<2x8xf32> to vector<2x8x1xf32>
    %84 = vector.broadcast %83 : vector<2x8x1xf32> to vector<2x8x8xf32>
    %85 = arith.subf %81, %84 : vector<2x8x8xf32>
    %86 = math.exp %85 : vector<2x8x8xf32>
    %cst_33 = arith.constant dense<0.000000e+00> : vector<2x8xf32>
    %87 = vector.multi_reduction <add>, %86, %cst_33 [2] : vector<2x8x8xf32> to vector<2x8xf32>
    %88 = vector.shape_cast %87 : vector<2x8xf32> to vector<2x8x1xf32>
    %89 = tpu.reciprocal %88 {approx = true} : vector<2x8x1xf32> -> vector<2x8x1xf32>
    %90 = vector.broadcast %89 : vector<2x8x1xf32> to vector<2x8x8xf32>
    %91 = arith.mulf %86, %90 : vector<2x8x8xf32>
    "tpu.trace_start"() <{level = 10 : i32, message = "bqk,bkd->bqd"}> : () -> ()
    %cst_34 = arith.constant dense<0.000000e+00> : vector<2x8x8xf32>
    %92 = tpu.matmul %91, %80, %cst_34 {dimension_numbers = #tpu.dot_dimension_numbers<[2], [1], [1], [2], [0, 0, 0, 1, 1, 2], [0], [0]>} : vector<2x8x8xf32>, vector<2x8x8xf32>, vector<2x8x8xf32> -> vector<2x8x8xf32>
    "tpu.trace_stop"() : () -> ()
    %93 = vector.shape_cast %92 : vector<2x8x8xf32> to vector<16x8xf32>
    %94 = vector.extract_strided_slice %5 {offsets = [16, 0], sizes = [8, 32], strides = [1, 1]} : vector<32x32xf32> to vector<8x32xf32>
    %cst_35 = arith.constant dense<0.000000e+00> : vector<16x32xf32>
    %95 = tpu.matmul %93, %94, %cst_35 {dimension_numbers = #tpu.dot_dimension_numbers<[1], [0], [0], [1], [0, 0, 1, 1], [], []>} : vector<16x8xf32>, vector<8x32xf32>, vector<16x32xf32> -> vector<16x32xf32>
    %96 = arith.addf %74, %95 : vector<16x32xf32>
    %97 = vector.extract_strided_slice %27 {offsets = [0, 24], sizes = [16, 8], strides = [1, 1]} : vector<16x32xf32> to vector<16x8xf32>
    %98 = vector.shape_cast %97 : vector<16x8xf32> to vector<2x8x8xf32>
    %99 = vector.extract_strided_slice %28 {offsets = [0, 24], sizes = [16, 8], strides = [1, 1]} : vector<16x32xf32> to vector<16x8xf32>
    %100 = vector.shape_cast %99 : vector<16x8xf32> to vector<2x8x8xf32>
    %101 = vector.extract_strided_slice %29 {offsets = [0, 24], sizes = [16, 8], strides = [1, 1]} : vector<16x32xf32> to vector<16x8xf32>
    %102 = vector.shape_cast %101 : vector<16x8xf32> to vector<2x8x8xf32>
    "tpu.trace_start"() <{level = 10 : i32, message = "bqd,bkd->bqk"}> : () -> ()
    %cst_36 = arith.constant dense<0.000000e+00> : vector<2x8x8xf32>
    %103 = tpu.matmul %98, %100, %cst_36 {dimension_numbers = #tpu.dot_dimension_numbers<[2], [2], [1], [1], [0, 0, 0, 1, 1, 1], [0], [0]>} : vector<2x8x8xf32>, vector<2x8x8xf32>, vector<2x8x8xf32> -> vector<2x8x8xf32>
    "tpu.trace_stop"() : () -> ()
    %cst_37 = arith.constant dense<0xFF800000> : vector<2x8xf32>
    %104 = vector.multi_reduction <maximumf>, %103, %cst_37 [2] : vector<2x8x8xf32> to vector<2x8xf32>
    %105 = vector.shape_cast %104 : vector<2x8xf32> to vector<2x8x1xf32>
    %106 = vector.broadcast %105 : vector<2x8x1xf32> to vector<2x8x8xf32>
    %107 = arith.subf %103, %106 : vector<2x8x8xf32>
    %108 = math.exp %107 : vector<2x8x8xf32>
    %cst_38 = arith.constant dense<0.000000e+00> : vector<2x8xf32>
    %109 = vector.multi_reduction <add>, %108, %cst_38 [2] : vector<2x8x8xf32> to vector<2x8xf32>
    %110 = vector.shape_cast %109 : vector<2x8xf32> to vector<2x8x1xf32>
    %111 = tpu.reciprocal %110 {approx = true} : vector<2x8x1xf32> -> vector<2x8x1xf32>
    %112 = vector.broadcast %111 : vector<2x8x1xf32> to vector<2x8x8xf32>
    %113 = arith.mulf %108, %112 : vector<2x8x8xf32>
    "tpu.trace_start"() <{level = 10 : i32, message = "bqk,bkd->bqd"}> : () -> ()
    %cst_39 = arith.constant dense<0.000000e+00> : vector<2x8x8xf32>
    %114 = tpu.matmul %113, %102, %cst_39 {dimension_numbers = #tpu.dot_dimension_numbers<[2], [1], [1], [2], [0, 0, 0, 1, 1, 2], [0], [0]>} : vector<2x8x8xf32>, vector<2x8x8xf32>, vector<2x8x8xf32> -> vector<2x8x8xf32>
    "tpu.trace_stop"() : () -> ()
    %115 = vector.shape_cast %114 : vector<2x8x8xf32> to vector<16x8xf32>
    %116 = vector.extract_strided_slice %5 {offsets = [24, 0], sizes = [8, 32], strides = [1, 1]} : vector<32x32xf32> to vector<8x32xf32>
    %cst_40 = arith.constant dense<0.000000e+00> : vector<16x32xf32>
    %117 = tpu.matmul %115, %116, %cst_40 {dimension_numbers = #tpu.dot_dimension_numbers<[1], [0], [0], [1], [0, 0, 1, 1], [], []>} : vector<16x8xf32>, vector<8x32xf32>, vector<16x32xf32> -> vector<16x32xf32>
    %118 = arith.addf %96, %117 : vector<16x32xf32>
    %119 = arith.addf %0, %118 : vector<16x32xf32>
    %cst_41 = arith.constant dense<0.000000e+00> : vector<16xf32>
    %120 = vector.multi_reduction <add>, %119, %cst_41 [1] : vector<16x32xf32> to vector<16xf32>
    %121 = vector.shape_cast %120 : vector<16xf32> to vector<16x1xf32>
    %cst_42 = arith.constant 3.200000e+01 : f32
    %122 = vector.broadcast %cst_42 : f32 to vector<16x1xf32>
    %123 = arith.divf %121, %122 : vector<16x1xf32>
    %124 = vector.broadcast %123 : vector<16x1xf32> to vector<16x32xf32>
    %125 = arith.subf %119, %124 : vector<16x32xf32>
    %126 = arith.mulf %125, %125 : vector<16x32xf32>
    %cst_43 = arith.constant dense<0.000000e+00> : vector<16xf32>
    %127 = vector.multi_reduction <add>, %126, %cst_43 [1] : vector<16x32xf32> to vector<16xf32>
    %128 = vector.shape_cast %127 : vector<16xf32> to vector<16x1xf32>
    %cst_44 = arith.constant 3.200000e+01 : f32
    %129 = vector.broadcast %cst_44 : f32 to vector<16x1xf32>
    %130 = arith.divf %128, %129 : vector<16x1xf32>
    %131 = vector.broadcast %123 : vector<16x1xf32> to vector<16x32xf32>
    %132 = arith.subf %119, %131 : vector<16x32xf32>
    %cst_45 = arith.constant 9.99999974E-6 : f32
    %133 = vector.broadcast %cst_45 : f32 to vector<16x1xf32>
    %134 = arith.addf %130, %133 : vector<16x1xf32>
    %135 = math.rsqrt %134 : vector<16x1xf32>
    %136 = vector.broadcast %135 : vector<16x1xf32> to vector<16x32xf32>
    %137 = arith.mulf %132, %136 : vector<16x32xf32>
    %138 = vector.broadcast %17 : vector<1x32xf32> to vector<16x32xf32>
    %139 = arith.mulf %137, %138 : vector<16x32xf32>
    %140 = vector.broadcast %18 : vector<1x32xf32> to vector<16x32xf32>
    %141 = arith.addf %139, %140 : vector<16x32xf32>
    %cst_46 = arith.constant dense<0.000000e+00> : vector<16x64xf32>
    %142 = tpu.matmul %141, %7, %cst_46 {dimension_numbers = #tpu.dot_dimension_numbers<[1], [0], [0], [1], [0, 0, 1, 1], [], []>} : vector<16x32xf32>, vector<32x64xf32>, vector<16x64xf32> -> vector<16x64xf32>
    %143 = vector.broadcast %15 : vector<1x64xf32> to vector<16x64xf32>
    %144 = arith.addf %142, %143 : vector<16x64xf32>
    %cst_47 = arith.constant 0.000000e+00 : f32
    %145 = vector.broadcast %cst_47 : f32 to vector<16x64xf32>
    %146 = arith.maximumf %144, %145 : vector<16x64xf32>
    %cst_48 = arith.constant dense<0.000000e+00> : vector<16x32xf32>
    %147 = tpu.matmul %146, %9, %cst_48 {dimension_numbers = #tpu.dot_dimension_numbers<[1], [0], [0], [1], [0, 0, 1, 1], [], []>} : vector<16x64xf32>, vector<64x32xf32>, vector<16x32xf32> -> vector<16x32xf32>
    %148 = vector.broadcast %19 : vector<1x32xf32> to vector<16x32xf32>
    %149 = arith.addf %147, %148 : vector<16x32xf32>
    %150 = arith.addf %141, %149 : vector<16x32xf32>
    %cst_49 = arith.constant dense<0.000000e+00> : vector<16xf32>
    %151 = vector.multi_reduction <add>, %150, %cst_49 [1] : vector<16x32xf32> to vector<16xf32>
    %152 = vector.shape_cast %151 : vector<16xf32> to vector<16x1xf32>
    %cst_50 = arith.constant 3.200000e+01 : f32
    %153 = vector.broadcast %cst_50 : f32 to vector<16x1xf32>
    %154 = arith.divf %152, %153 : vector<16x1xf32>
    %155 = vector.broadcast %154 : vector<16x1xf32> to vector<16x32xf32>
    %156 = arith.subf %150, %155 : vector<16x32xf32>
    %157 = arith.mulf %156, %156 : vector<16x32xf32>
    %cst_51 = arith.constant dense<0.000000e+00> : vector<16xf32>
    %158 = vector.multi_reduction <add>, %157, %cst_51 [1] : vector<16x32xf32> to vector<16xf32>
    %159 = vector.shape_cast %158 : vector<16xf32> to vector<16x1xf32>
    %cst_52 = arith.constant 3.200000e+01 : f32
    %160 = vector.broadcast %cst_52 : f32 to vector<16x1xf32>
    %161 = arith.divf %159, %160 : vector<16x1xf32>
    %162 = vector.broadcast %154 : vector<16x1xf32> to vector<16x32xf32>
    %163 = arith.subf %150, %162 : vector<16x32xf32>
    %cst_53 = arith.constant 9.99999974E-6 : f32
    %164 = vector.broadcast %cst_53 : f32 to vector<16x1xf32>
    %165 = arith.addf %161, %164 : vector<16x1xf32>
    %166 = math.rsqrt %165 : vector<16x1xf32>
    %167 = vector.broadcast %166 : vector<16x1xf32> to vector<16x32xf32>
    %168 = arith.mulf %163, %167 : vector<16x32xf32>
    %169 = vector.broadcast %20 : vector<1x32xf32> to vector<16x32xf32>
    %170 = arith.mulf %168, %169 : vector<16x32xf32>
    %171 = vector.broadcast %21 : vector<1x32xf32> to vector<16x32xf32>
    %172 = arith.addf %170, %171 : vector<16x32xf32>
    %c1 = arith.constant 1 : index
    %c0_54 = arith.constant 0 : index
    %c0_55 = arith.constant 0 : index
    %173 = vector.load %arg2[%c1, %c0_54, %c0_55] : memref<2x32x96xf32, #tpu.memory_space<vmem>>, vector<1x32x96xf32>
    %174 = vector.shape_cast %173 : vector<1x32x96xf32> to vector<32x96xf32>
    %c1_56 = arith.constant 1 : index
    %c0_57 = arith.constant 0 : index
    %c0_58 = arith.constant 0 : index
    %175 = vector.load %arg3[%c1_56, %c0_57, %c0_58] : memref<2x32x32xf32, #tpu.memory_space<vmem>>, vector<1x32x32xf32>
    %176 = vector.shape_cast %175 : vector<1x32x32xf32> to vector<32x32xf32>
    %c1_59 = arith.constant 1 : index
    %c0_60 = arith.constant 0 : index
    %c0_61 = arith.constant 0 : index
    %177 = vector.load %arg4[%c1_59, %c0_60, %c0_61] : memref<2x32x64xf32, #tpu.memory_space<vmem>>, vector<1x32x64xf32>
    %178 = vector.shape_cast %177 : vector<1x32x64xf32> to vector<32x64xf32>
    %c1_62 = arith.constant 1 : index
    %c0_63 = arith.constant 0 : index
    %c0_64 = arith.constant 0 : index
    %179 = vector.load %arg5[%c1_62, %c0_63, %c0_64] : memref<2x64x32xf32, #tpu.memory_space<vmem>>, vector<1x64x32xf32>
    %180 = vector.shape_cast %179 : vector<1x64x32xf32> to vector<64x32xf32>
    %c1_65 = arith.constant 1 : index
    %c0_66 = arith.constant 0 : index
    %c0_67 = arith.constant 0 : index
    %181 = vector.load %arg6[%c1_65, %c0_66, %c0_67] : memref<2x2x96xf32, #tpu.memory_space<vmem>>, vector<1x2x96xf32>
    %182 = vector.shape_cast %181 : vector<1x2x96xf32> to vector<2x96xf32>
    %c1_68 = arith.constant 1 : index
    %c0_69 = arith.constant 0 : index
    %c0_70 = arith.constant 0 : index
    %183 = vector.load %arg7[%c1_68, %c0_69, %c0_70] : memref<2x8x32xf32, #tpu.memory_space<vmem>>, vector<1x8x32xf32>
    %184 = vector.shape_cast %183 : vector<1x8x32xf32> to vector<8x32xf32>
    %185 = vector.extract_strided_slice %182 {offsets = [0, 0], sizes = [1, 96], strides = [1, 1]} : vector<2x96xf32> to vector<1x96xf32>
    %186 = vector.extract_strided_slice %182 {offsets = [1, 0], sizes = [1, 64], strides = [1, 1]} : vector<2x96xf32> to vector<1x64xf32>
    %187 = vector.extract_strided_slice %184 {offsets = [0, 0], sizes = [1, 32], strides = [1, 1]} : vector<8x32xf32> to vector<1x32xf32>
    %188 = vector.extract_strided_slice %184 {offsets = [1, 0], sizes = [1, 32], strides = [1, 1]} : vector<8x32xf32> to vector<1x32xf32>
    %189 = vector.extract_strided_slice %184 {offsets = [2, 0], sizes = [1, 32], strides = [1, 1]} : vector<8x32xf32> to vector<1x32xf32>
    %190 = vector.extract_strided_slice %184 {offsets = [3, 0], sizes = [1, 32], strides = [1, 1]} : vector<8x32xf32> to vector<1x32xf32>
    %191 = vector.extract_strided_slice %184 {offsets = [4, 0], sizes = [1, 32], strides = [1, 1]} : vector<8x32xf32> to vector<1x32xf32>
    %192 = vector.extract_strided_slice %184 {offsets = [5, 0], sizes = [1, 32], strides = [1, 1]} : vector<8x32xf32> to vector<1x32xf32>
    %193 = arith.addf %172, %1 : vector<16x32xf32>
    %194 = tpu.concatenate %193, %172 in 0 : vector<16x32xf32>, vector<16x32xf32> -> vector<32x32xf32>
    %cst_71 = arith.constant dense<0.000000e+00> : vector<32x96xf32>
    %195 = tpu.matmul %194, %174, %cst_71 {dimension_numbers = #tpu.dot_dimension_numbers<[1], [0], [0], [1], [0, 0, 1, 1], [], []>} : vector<32x32xf32>, vector<32x96xf32>, vector<32x96xf32> -> vector<32x96xf32>
    %196 = vector.broadcast %185 : vector<1x96xf32> to vector<32x96xf32>
    %197 = arith.addf %195, %196 : vector<32x96xf32>
    %198 = vector.extract_strided_slice %197 {offsets = [0, 0], sizes = [16, 32], strides = [1, 1]} : vector<32x96xf32> to vector<16x32xf32>
    %199 = vector.extract_strided_slice %197 {offsets = [0, 32], sizes = [16, 32], strides = [1, 1]} : vector<32x96xf32> to vector<16x32xf32>
    %200 = vector.extract_strided_slice %197 {offsets = [16, 64], sizes = [16, 32], strides = [1, 1]} : vector<32x96xf32> to vector<16x32xf32>
    %201 = vector.extract_strided_slice %198 {offsets = [0, 0], sizes = [16, 8], strides = [1, 1]} : vector<16x32xf32> to vector<16x8xf32>
    %202 = vector.shape_cast %201 : vector<16x8xf32> to vector<2x8x8xf32>
    %203 = vector.extract_strided_slice %199 {offsets = [0, 0], sizes = [16, 8], strides = [1, 1]} : vector<16x32xf32> to vector<16x8xf32>
    %204 = vector.shape_cast %203 : vector<16x8xf32> to vector<2x8x8xf32>
    %205 = vector.extract_strided_slice %200 {offsets = [0, 0], sizes = [16, 8], strides = [1, 1]} : vector<16x32xf32> to vector<16x8xf32>
    %206 = vector.shape_cast %205 : vector<16x8xf32> to vector<2x8x8xf32>
    "tpu.trace_start"() <{level = 10 : i32, message = "bqd,bkd->bqk"}> : () -> ()
    %cst_72 = arith.constant dense<0.000000e+00> : vector<2x8x8xf32>
    %207 = tpu.matmul %202, %204, %cst_72 {dimension_numbers = #tpu.dot_dimension_numbers<[2], [2], [1], [1], [0, 0, 0, 1, 1, 1], [0], [0]>} : vector<2x8x8xf32>, vector<2x8x8xf32>, vector<2x8x8xf32> -> vector<2x8x8xf32>
    "tpu.trace_stop"() : () -> ()
    %cst_73 = arith.constant dense<0xFF800000> : vector<2x8xf32>
    %208 = vector.multi_reduction <maximumf>, %207, %cst_73 [2] : vector<2x8x8xf32> to vector<2x8xf32>
    %209 = vector.shape_cast %208 : vector<2x8xf32> to vector<2x8x1xf32>
    %210 = vector.broadcast %209 : vector<2x8x1xf32> to vector<2x8x8xf32>
    %211 = arith.subf %207, %210 : vector<2x8x8xf32>
    %212 = math.exp %211 : vector<2x8x8xf32>
    %cst_74 = arith.constant dense<0.000000e+00> : vector<2x8xf32>
    %213 = vector.multi_reduction <add>, %212, %cst_74 [2] : vector<2x8x8xf32> to vector<2x8xf32>
    %214 = vector.shape_cast %213 : vector<2x8xf32> to vector<2x8x1xf32>
    %215 = tpu.reciprocal %214 {approx = true} : vector<2x8x1xf32> -> vector<2x8x1xf32>
    %216 = vector.broadcast %215 : vector<2x8x1xf32> to vector<2x8x8xf32>
    %217 = arith.mulf %212, %216 : vector<2x8x8xf32>
    "tpu.trace_start"() <{level = 10 : i32, message = "bqk,bkd->bqd"}> : () -> ()
    %cst_75 = arith.constant dense<0.000000e+00> : vector<2x8x8xf32>
    %218 = tpu.matmul %217, %206, %cst_75 {dimension_numbers = #tpu.dot_dimension_numbers<[2], [1], [1], [2], [0, 0, 0, 1, 1, 2], [0], [0]>} : vector<2x8x8xf32>, vector<2x8x8xf32>, vector<2x8x8xf32> -> vector<2x8x8xf32>
    "tpu.trace_stop"() : () -> ()
    %219 = vector.shape_cast %218 : vector<2x8x8xf32> to vector<16x8xf32>
    %220 = vector.extract_strided_slice %176 {offsets = [0, 0], sizes = [8, 32], strides = [1, 1]} : vector<32x32xf32> to vector<8x32xf32>
    %cst_76 = arith.constant dense<0.000000e+00> : vector<16x32xf32>
    %221 = tpu.matmul %219, %220, %cst_76 {dimension_numbers = #tpu.dot_dimension_numbers<[1], [0], [0], [1], [0, 0, 1, 1], [], []>} : vector<16x8xf32>, vector<8x32xf32>, vector<16x32xf32> -> vector<16x32xf32>
    %222 = vector.broadcast %187 : vector<1x32xf32> to vector<16x32xf32>
    %223 = arith.addf %222, %221 : vector<16x32xf32>
    %224 = vector.extract_strided_slice %198 {offsets = [0, 8], sizes = [16, 8], strides = [1, 1]} : vector<16x32xf32> to vector<16x8xf32>
    %225 = vector.shape_cast %224 : vector<16x8xf32> to vector<2x8x8xf32>
    %226 = vector.extract_strided_slice %199 {offsets = [0, 8], sizes = [16, 8], strides = [1, 1]} : vector<16x32xf32> to vector<16x8xf32>
    %227 = vector.shape_cast %226 : vector<16x8xf32> to vector<2x8x8xf32>
    %228 = vector.extract_strided_slice %200 {offsets = [0, 8], sizes = [16, 8], strides = [1, 1]} : vector<16x32xf32> to vector<16x8xf32>
    %229 = vector.shape_cast %228 : vector<16x8xf32> to vector<2x8x8xf32>
    "tpu.trace_start"() <{level = 10 : i32, message = "bqd,bkd->bqk"}> : () -> ()
    %cst_77 = arith.constant dense<0.000000e+00> : vector<2x8x8xf32>
    %230 = tpu.matmul %225, %227, %cst_77 {dimension_numbers = #tpu.dot_dimension_numbers<[2], [2], [1], [1], [0, 0, 0, 1, 1, 1], [0], [0]>} : vector<2x8x8xf32>, vector<2x8x8xf32>, vector<2x8x8xf32> -> vector<2x8x8xf32>
    "tpu.trace_stop"() : () -> ()
    %cst_78 = arith.constant dense<0xFF800000> : vector<2x8xf32>
    %231 = vector.multi_reduction <maximumf>, %230, %cst_78 [2] : vector<2x8x8xf32> to vector<2x8xf32>
    %232 = vector.shape_cast %231 : vector<2x8xf32> to vector<2x8x1xf32>
    %233 = vector.broadcast %232 : vector<2x8x1xf32> to vector<2x8x8xf32>
    %234 = arith.subf %230, %233 : vector<2x8x8xf32>
    %235 = math.exp %234 : vector<2x8x8xf32>
    %cst_79 = arith.constant dense<0.000000e+00> : vector<2x8xf32>
    %236 = vector.multi_reduction <add>, %235, %cst_79 [2] : vector<2x8x8xf32> to vector<2x8xf32>
    %237 = vector.shape_cast %236 : vector<2x8xf32> to vector<2x8x1xf32>
    %238 = tpu.reciprocal %237 {approx = true} : vector<2x8x1xf32> -> vector<2x8x1xf32>
    %239 = vector.broadcast %238 : vector<2x8x1xf32> to vector<2x8x8xf32>
    %240 = arith.mulf %235, %239 : vector<2x8x8xf32>
    "tpu.trace_start"() <{level = 10 : i32, message = "bqk,bkd->bqd"}> : () -> ()
    %cst_80 = arith.constant dense<0.000000e+00> : vector<2x8x8xf32>
    %241 = tpu.matmul %240, %229, %cst_80 {dimension_numbers = #tpu.dot_dimension_numbers<[2], [1], [1], [2], [0, 0, 0, 1, 1, 2], [0], [0]>} : vector<2x8x8xf32>, vector<2x8x8xf32>, vector<2x8x8xf32> -> vector<2x8x8xf32>
    "tpu.trace_stop"() : () -> ()
    %242 = vector.shape_cast %241 : vector<2x8x8xf32> to vector<16x8xf32>
    %243 = vector.extract_strided_slice %176 {offsets = [8, 0], sizes = [8, 32], strides = [1, 1]} : vector<32x32xf32> to vector<8x32xf32>
    %cst_81 = arith.constant dense<0.000000e+00> : vector<16x32xf32>
    %244 = tpu.matmul %242, %243, %cst_81 {dimension_numbers = #tpu.dot_dimension_numbers<[1], [0], [0], [1], [0, 0, 1, 1], [], []>} : vector<16x8xf32>, vector<8x32xf32>, vector<16x32xf32> -> vector<16x32xf32>
    %245 = arith.addf %223, %244 : vector<16x32xf32>
    %246 = vector.extract_strided_slice %198 {offsets = [0, 16], sizes = [16, 8], strides = [1, 1]} : vector<16x32xf32> to vector<16x8xf32>
    %247 = vector.shape_cast %246 : vector<16x8xf32> to vector<2x8x8xf32>
    %248 = vector.extract_strided_slice %199 {offsets = [0, 16], sizes = [16, 8], strides = [1, 1]} : vector<16x32xf32> to vector<16x8xf32>
    %249 = vector.shape_cast %248 : vector<16x8xf32> to vector<2x8x8xf32>
    %250 = vector.extract_strided_slice %200 {offsets = [0, 16], sizes = [16, 8], strides = [1, 1]} : vector<16x32xf32> to vector<16x8xf32>
    %251 = vector.shape_cast %250 : vector<16x8xf32> to vector<2x8x8xf32>
    "tpu.trace_start"() <{level = 10 : i32, message = "bqd,bkd->bqk"}> : () -> ()
    %cst_82 = arith.constant dense<0.000000e+00> : vector<2x8x8xf32>
    %252 = tpu.matmul %247, %249, %cst_82 {dimension_numbers = #tpu.dot_dimension_numbers<[2], [2], [1], [1], [0, 0, 0, 1, 1, 1], [0], [0]>} : vector<2x8x8xf32>, vector<2x8x8xf32>, vector<2x8x8xf32> -> vector<2x8x8xf32>
    "tpu.trace_stop"() : () -> ()
    %cst_83 = arith.constant dense<0xFF800000> : vector<2x8xf32>
    %253 = vector.multi_reduction <maximumf>, %252, %cst_83 [2] : vector<2x8x8xf32> to vector<2x8xf32>
    %254 = vector.shape_cast %253 : vector<2x8xf32> to vector<2x8x1xf32>
    %255 = vector.broadcast %254 : vector<2x8x1xf32> to vector<2x8x8xf32>
    %256 = arith.subf %252, %255 : vector<2x8x8xf32>
    %257 = math.exp %256 : vector<2x8x8xf32>
    %cst_84 = arith.constant dense<0.000000e+00> : vector<2x8xf32>
    %258 = vector.multi_reduction <add>, %257, %cst_84 [2] : vector<2x8x8xf32> to vector<2x8xf32>
    %259 = vector.shape_cast %258 : vector<2x8xf32> to vector<2x8x1xf32>
    %260 = tpu.reciprocal %259 {approx = true} : vector<2x8x1xf32> -> vector<2x8x1xf32>
    %261 = vector.broadcast %260 : vector<2x8x1xf32> to vector<2x8x8xf32>
    %262 = arith.mulf %257, %261 : vector<2x8x8xf32>
    "tpu.trace_start"() <{level = 10 : i32, message = "bqk,bkd->bqd"}> : () -> ()
    %cst_85 = arith.constant dense<0.000000e+00> : vector<2x8x8xf32>
    %263 = tpu.matmul %262, %251, %cst_85 {dimension_numbers = #tpu.dot_dimension_numbers<[2], [1], [1], [2], [0, 0, 0, 1, 1, 2], [0], [0]>} : vector<2x8x8xf32>, vector<2x8x8xf32>, vector<2x8x8xf32> -> vector<2x8x8xf32>
    "tpu.trace_stop"() : () -> ()
    %264 = vector.shape_cast %263 : vector<2x8x8xf32> to vector<16x8xf32>
    %265 = vector.extract_strided_slice %176 {offsets = [16, 0], sizes = [8, 32], strides = [1, 1]} : vector<32x32xf32> to vector<8x32xf32>
    %cst_86 = arith.constant dense<0.000000e+00> : vector<16x32xf32>
    %266 = tpu.matmul %264, %265, %cst_86 {dimension_numbers = #tpu.dot_dimension_numbers<[1], [0], [0], [1], [0, 0, 1, 1], [], []>} : vector<16x8xf32>, vector<8x32xf32>, vector<16x32xf32> -> vector<16x32xf32>
    %267 = arith.addf %245, %266 : vector<16x32xf32>
    %268 = vector.extract_strided_slice %198 {offsets = [0, 24], sizes = [16, 8], strides = [1, 1]} : vector<16x32xf32> to vector<16x8xf32>
    %269 = vector.shape_cast %268 : vector<16x8xf32> to vector<2x8x8xf32>
    %270 = vector.extract_strided_slice %199 {offsets = [0, 24], sizes = [16, 8], strides = [1, 1]} : vector<16x32xf32> to vector<16x8xf32>
    %271 = vector.shape_cast %270 : vector<16x8xf32> to vector<2x8x8xf32>
    %272 = vector.extract_strided_slice %200 {offsets = [0, 24], sizes = [16, 8], strides = [1, 1]} : vector<16x32xf32> to vector<16x8xf32>
    %273 = vector.shape_cast %272 : vector<16x8xf32> to vector<2x8x8xf32>
    "tpu.trace_start"() <{level = 10 : i32, message = "bqd,bkd->bqk"}> : () -> ()
    %cst_87 = arith.constant dense<0.000000e+00> : vector<2x8x8xf32>
    %274 = tpu.matmul %269, %271, %cst_87 {dimension_numbers = #tpu.dot_dimension_numbers<[2], [2], [1], [1], [0, 0, 0, 1, 1, 1], [0], [0]>} : vector<2x8x8xf32>, vector<2x8x8xf32>, vector<2x8x8xf32> -> vector<2x8x8xf32>
    "tpu.trace_stop"() : () -> ()
    %cst_88 = arith.constant dense<0xFF800000> : vector<2x8xf32>
    %275 = vector.multi_reduction <maximumf>, %274, %cst_88 [2] : vector<2x8x8xf32> to vector<2x8xf32>
    %276 = vector.shape_cast %275 : vector<2x8xf32> to vector<2x8x1xf32>
    %277 = vector.broadcast %276 : vector<2x8x1xf32> to vector<2x8x8xf32>
    %278 = arith.subf %274, %277 : vector<2x8x8xf32>
    %279 = math.exp %278 : vector<2x8x8xf32>
    %cst_89 = arith.constant dense<0.000000e+00> : vector<2x8xf32>
    %280 = vector.multi_reduction <add>, %279, %cst_89 [2] : vector<2x8x8xf32> to vector<2x8xf32>
    %281 = vector.shape_cast %280 : vector<2x8xf32> to vector<2x8x1xf32>
    %282 = tpu.reciprocal %281 {approx = true} : vector<2x8x1xf32> -> vector<2x8x1xf32>
    %283 = vector.broadcast %282 : vector<2x8x1xf32> to vector<2x8x8xf32>
    %284 = arith.mulf %279, %283 : vector<2x8x8xf32>
    "tpu.trace_start"() <{level = 10 : i32, message = "bqk,bkd->bqd"}> : () -> ()
    %cst_90 = arith.constant dense<0.000000e+00> : vector<2x8x8xf32>
    %285 = tpu.matmul %284, %273, %cst_90 {dimension_numbers = #tpu.dot_dimension_numbers<[2], [1], [1], [2], [0, 0, 0, 1, 1, 2], [0], [0]>} : vector<2x8x8xf32>, vector<2x8x8xf32>, vector<2x8x8xf32> -> vector<2x8x8xf32>
    "tpu.trace_stop"() : () -> ()
    %286 = vector.shape_cast %285 : vector<2x8x8xf32> to vector<16x8xf32>
    %287 = vector.extract_strided_slice %176 {offsets = [24, 0], sizes = [8, 32], strides = [1, 1]} : vector<32x32xf32> to vector<8x32xf32>
    %cst_91 = arith.constant dense<0.000000e+00> : vector<16x32xf32>
    %288 = tpu.matmul %286, %287, %cst_91 {dimension_numbers = #tpu.dot_dimension_numbers<[1], [0], [0], [1], [0, 0, 1, 1], [], []>} : vector<16x8xf32>, vector<8x32xf32>, vector<16x32xf32> -> vector<16x32xf32>
    %289 = arith.addf %267, %288 : vector<16x32xf32>
    %290 = arith.addf %172, %289 : vector<16x32xf32>
    %cst_92 = arith.constant dense<0.000000e+00> : vector<16xf32>
    %291 = vector.multi_reduction <add>, %290, %cst_92 [1] : vector<16x32xf32> to vector<16xf32>
    %292 = vector.shape_cast %291 : vector<16xf32> to vector<16x1xf32>
    %cst_93 = arith.constant 3.200000e+01 : f32
    %293 = vector.broadcast %cst_93 : f32 to vector<16x1xf32>
    %294 = arith.divf %292, %293 : vector<16x1xf32>
    %295 = vector.broadcast %294 : vector<16x1xf32> to vector<16x32xf32>
    %296 = arith.subf %290, %295 : vector<16x32xf32>
    %297 = arith.mulf %296, %296 : vector<16x32xf32>
    %cst_94 = arith.constant dense<0.000000e+00> : vector<16xf32>
    %298 = vector.multi_reduction <add>, %297, %cst_94 [1] : vector<16x32xf32> to vector<16xf32>
    %299 = vector.shape_cast %298 : vector<16xf32> to vector<16x1xf32>
    %cst_95 = arith.constant 3.200000e+01 : f32
    %300 = vector.broadcast %cst_95 : f32 to vector<16x1xf32>
    %301 = arith.divf %299, %300 : vector<16x1xf32>
    %302 = vector.broadcast %294 : vector<16x1xf32> to vector<16x32xf32>
    %303 = arith.subf %290, %302 : vector<16x32xf32>
    %cst_96 = arith.constant 9.99999974E-6 : f32
    %304 = vector.broadcast %cst_96 : f32 to vector<16x1xf32>
    %305 = arith.addf %301, %304 : vector<16x1xf32>
    %306 = math.rsqrt %305 : vector<16x1xf32>
    %307 = vector.broadcast %306 : vector<16x1xf32> to vector<16x32xf32>
    %308 = arith.mulf %303, %307 : vector<16x32xf32>
    %309 = vector.broadcast %188 : vector<1x32xf32> to vector<16x32xf32>
    %310 = arith.mulf %308, %309 : vector<16x32xf32>
    %311 = vector.broadcast %189 : vector<1x32xf32> to vector<16x32xf32>
    %312 = arith.addf %310, %311 : vector<16x32xf32>
    %cst_97 = arith.constant dense<0.000000e+00> : vector<16x64xf32>
    %313 = tpu.matmul %312, %178, %cst_97 {dimension_numbers = #tpu.dot_dimension_numbers<[1], [0], [0], [1], [0, 0, 1, 1], [], []>} : vector<16x32xf32>, vector<32x64xf32>, vector<16x64xf32> -> vector<16x64xf32>
    %314 = vector.broadcast %186 : vector<1x64xf32> to vector<16x64xf32>
    %315 = arith.addf %313, %314 : vector<16x64xf32>
    %cst_98 = arith.constant 0.000000e+00 : f32
    %316 = vector.broadcast %cst_98 : f32 to vector<16x64xf32>
    %317 = arith.maximumf %315, %316 : vector<16x64xf32>
    %cst_99 = arith.constant dense<0.000000e+00> : vector<16x32xf32>
    %318 = tpu.matmul %317, %180, %cst_99 {dimension_numbers = #tpu.dot_dimension_numbers<[1], [0], [0], [1], [0, 0, 1, 1], [], []>} : vector<16x64xf32>, vector<64x32xf32>, vector<16x32xf32> -> vector<16x32xf32>
    %319 = vector.broadcast %190 : vector<1x32xf32> to vector<16x32xf32>
    %320 = arith.addf %318, %319 : vector<16x32xf32>
    %321 = arith.addf %312, %320 : vector<16x32xf32>
    %cst_100 = arith.constant dense<0.000000e+00> : vector<16xf32>
    %322 = vector.multi_reduction <add>, %321, %cst_100 [1] : vector<16x32xf32> to vector<16xf32>
    %323 = vector.shape_cast %322 : vector<16xf32> to vector<16x1xf32>
    %cst_101 = arith.constant 3.200000e+01 : f32
    %324 = vector.broadcast %cst_101 : f32 to vector<16x1xf32>
    %325 = arith.divf %323, %324 : vector<16x1xf32>
    %326 = vector.broadcast %325 : vector<16x1xf32> to vector<16x32xf32>
    %327 = arith.subf %321, %326 : vector<16x32xf32>
    %328 = arith.mulf %327, %327 : vector<16x32xf32>
    %cst_102 = arith.constant dense<0.000000e+00> : vector<16xf32>
    %329 = vector.multi_reduction <add>, %328, %cst_102 [1] : vector<16x32xf32> to vector<16xf32>
    %330 = vector.shape_cast %329 : vector<16xf32> to vector<16x1xf32>
    %cst_103 = arith.constant 3.200000e+01 : f32
    %331 = vector.broadcast %cst_103 : f32 to vector<16x1xf32>
    %332 = arith.divf %330, %331 : vector<16x1xf32>
    %333 = vector.broadcast %325 : vector<16x1xf32> to vector<16x32xf32>
    %334 = arith.subf %321, %333 : vector<16x32xf32>
    %cst_104 = arith.constant 9.99999974E-6 : f32
    %335 = vector.broadcast %cst_104 : f32 to vector<16x1xf32>
    %336 = arith.addf %332, %335 : vector<16x1xf32>
    %337 = math.rsqrt %336 : vector<16x1xf32>
    %338 = vector.broadcast %337 : vector<16x1xf32> to vector<16x32xf32>
    %339 = arith.mulf %334, %338 : vector<16x32xf32>
    %340 = vector.broadcast %191 : vector<1x32xf32> to vector<16x32xf32>
    %341 = arith.mulf %339, %340 : vector<16x32xf32>
    %342 = vector.broadcast %192 : vector<1x32xf32> to vector<16x32xf32>
    %343 = arith.addf %341, %342 : vector<16x32xf32>
    %c0_105 = arith.constant 0 : index
    %c0_106 = arith.constant 0 : index
    %344 = vector.load %arg8[%c0_105, %c0_106] : memref<2x32xf32, #tpu.memory_space<vmem>>, vector<2x32xf32>
    %345 = vector.extract_strided_slice %344 {offsets = [0, 0], sizes = [1, 32], strides = [1, 1]} : vector<2x32xf32> to vector<1x32xf32>
    %346 = vector.extract_strided_slice %344 {offsets = [1, 0], sizes = [1, 32], strides = [1, 1]} : vector<2x32xf32> to vector<1x32xf32>
    %cst_107 = arith.constant dense<0.000000e+00> : vector<16xf32>
    %347 = vector.multi_reduction <add>, %343, %cst_107 [1] : vector<16x32xf32> to vector<16xf32>
    %348 = vector.shape_cast %347 : vector<16xf32> to vector<16x1xf32>
    %cst_108 = arith.constant 3.200000e+01 : f32
    %349 = vector.broadcast %cst_108 : f32 to vector<16x1xf32>
    %350 = arith.divf %348, %349 : vector<16x1xf32>
    %351 = vector.broadcast %350 : vector<16x1xf32> to vector<16x32xf32>
    %352 = arith.subf %343, %351 : vector<16x32xf32>
    %353 = arith.mulf %352, %352 : vector<16x32xf32>
    %cst_109 = arith.constant dense<0.000000e+00> : vector<16xf32>
    %354 = vector.multi_reduction <add>, %353, %cst_109 [1] : vector<16x32xf32> to vector<16xf32>
    %355 = vector.shape_cast %354 : vector<16xf32> to vector<16x1xf32>
    %cst_110 = arith.constant 3.200000e+01 : f32
    %356 = vector.broadcast %cst_110 : f32 to vector<16x1xf32>
    %357 = arith.divf %355, %356 : vector<16x1xf32>
    %358 = vector.broadcast %350 : vector<16x1xf32> to vector<16x32xf32>
    %359 = arith.subf %343, %358 : vector<16x32xf32>
    %cst_111 = arith.constant 9.99999974E-6 : f32
    %360 = vector.broadcast %cst_111 : f32 to vector<16x1xf32>
    %361 = arith.addf %357, %360 : vector<16x1xf32>
    %362 = math.rsqrt %361 : vector<16x1xf32>
    %363 = vector.broadcast %362 : vector<16x1xf32> to vector<16x32xf32>
    %364 = arith.mulf %359, %363 : vector<16x32xf32>
    %365 = vector.broadcast %345 : vector<1x32xf32> to vector<16x32xf32>
    %366 = arith.mulf %364, %365 : vector<16x32xf32>
    %367 = vector.broadcast %346 : vector<1x32xf32> to vector<16x32xf32>
    %368 = arith.addf %366, %367 : vector<16x32xf32>
    %c0_112 = arith.constant 0 : index
    %c0_113 = arith.constant 0 : index
    %369 = vector.load %arg9[%c0_112, %c0_113] : memref<16x32xf32, #tpu.memory_space<vmem>>, vector<16x32xf32>
    tpu.vector_store %arg9[%c0_112, %c0_113], %368 {strides = array<i32>} : memref<16x32xf32, #tpu.memory_space<vmem>>, vector<16x32xf32>,
    return
  }
}

</mosaic_0001>

<bundles_post_ra>
// kernel: transformer_encoder.1
= control target key start
LH: loop header
LB: loop body
LE: loop exit
PB: predicated region body
PF: predicated region fallthrough
CT: control target
= control target key end

     0   :  { %vm64_vm0 = vcmask 261120   ;;  %v4860_v12 = vmov 0.0   ;;  %v60_v13 = vlaneseq  ;;  %vm4861_vm1 = vmmov 0   ;;  %s4862_s25 = smov 96   ;;  %s4863_s26 = smov 64   ;;  %s5504_s2 = inlined_call_operand.vmem [shape: f32[2,32,96], index: 2, kind: input, shape index: {}]   ;;  %s5505_s0 = inlined_call_operand.vmem [shape: f32[16,32], index: 0, kind: input, shape index: {}]   ;;  %s5506_s1 = inlined_call_operand.vmem [shape: f32[16,32], index: 1, kind: input, shape index: {}]   ;;  %s5507_s6 = inlined_call_operand.vmem [shape: f32[2,2,96], index: 6, kind: input, shape index: {}]   ;;  %s5508_s3 = inlined_call_operand.vmem [shape: f32[2,32,32], index: 3, kind: input, shape index: {}]   ;;  %s5509_s7 = inlined_call_operand.vmem [shape: f32[2,8,32], index: 7, kind: input, shape index: {}]   ;;  %s5510_s4 = inlined_call_operand.vmem [shape: f32[2,32,64], index: 4, kind: input, shape index: {}]   ;;  %s5511_s5 = inlined_call_operand.vmem [shape: f32[2,64,32], index: 5, kind: input, shape index: {}]   ;;  %s5512_s8 = inlined_call_operand.vmem [shape: f32[2,32], index: 8, kind: input, shape index: {}]   ;;  %s5513_s9 = inlined_call_operand.vmem [shape: f32[16,32], index: 9, kind: output, shape index: {}]  }
   0x1   :  { %v36_v0 = vld [vmem:[%s5504_s2] sm:$0xff]  ;;  %v37_v1 = vld [vmem:[%s5504_s2 + $0x8] sm:$0xff]  ;;  %v38_v2 = vld [vmem:[%s5504_s2 + $0x10] sm:$0xff]  ;;  %4409 = vmatprep.subr.mxu1 %v4860_v12  ;;  %4411 = vmatprep.mubr.msk.f32.mxu1 %vm4861_vm1, %v4860_v12  ;;  %vm165_vm2 = vcmask 64512   ;;  %s4864_s27 = smov 88   ;;  %s4865_s28 = smov 120  }
   0x2   :  { %v4683_v3 = vpack.c.bf16 %v37_v1, %v36_v0  ;;  %v39_v4 = vld [vmem:[%s5504_s2 + $0x18] sm:$0xff]  ;;  %v4938_v5 = vld [vmem:[%s5505_s0] sm:$0xff]  ;;  %v4950_v9 = vld [vmem:[%s5505_s0 + $0x8] sm:$0xff]  ;;  %v4967_v14 = vshrl.u32 %v60_v13, 7  ;;  %s4866_s10 = smov 56   ;;  %s4867_s11 = smov 112  }
   0x3   :  { %v4687_v6 = vpack.c.bf16 %v39_v4, %v38_v2  ;;  %v4943_v7 = vld [vmem:[%s5506_s1] sm:$0xff]  ;;  %v4955_v10 = vld [vmem:[%s5506_s1 + $0x8] sm:$0xff]  ;;  %s4868_s12 = smov 80   ;;  %s4869_s13 = smov 48   ;;  %vm1951_vm3 = vcmask 523264  }
   0x4   :  { %4684 = vmatprep.subr.bf16.mxu0 %v4683_v3  ;;  %v58_v8 = vadd.f32 %v4943_v7, %v4938_v5  ;;  %v59_v11 = vadd.f32 %v4955_v10, %v4950_v9  ;;  %v4974_v15 = vsub.s32 0, %v4967_v14  ;;  %v4979_v16 = vld [vmem:[%s5507_s6] sm:$0x3]  ;;  %s4870_s14 = smov 72   ;;  %s4871_s15 = smov 104  }
   0x5   :  { %4686 = vmatpush3.bf16.msra.mxu0 %v4683_v3  ;;  %v40_v45 = vld [vmem:[%s5508_s3] sm:$0xff]  ;;  %s4872_s20 = smov 40  }
   0x6   :  { %4688 = vmatprep.subr.bf16.mxu0 %v4687_v6  ;;  %4403 = vmatprep.mubr.msk.f32.mxu0 %vm64_vm0, %v58_v8  ;;  %v63_v17 = vrot.slane %v4979_v16, %v4974_v15 }
   0x9   :  { %4690 = vmatpush3.bf16.msra.mxu0 %v4687_v6 }
   0xa   :  { %4424 = vmatprep.subr.mxu0 %v4860_v12 }
   0xc   :  { %4404 = vmatmul.mubr.msk.f32.vlgmr.msra.gmra.mrb[0].mxu0 %vm64_vm0, %v59_v11 }
   0xd   :  { %4406 = vmatprep.mubr.msk.f32.mxu0 %vm64_vm0, %v4938_v5 }
  0x10   :  { %4407 = vmatmul.mubr.msk.f32.gmra.mrb[2].mxu0 %vm64_vm0, %v4950_v9 }
  0x11   :  { %4426 = vmatprep.mubr.msk.f32.mxu0 %vm4861_vm1, %v4860_v12 }
  0xdf   :  { %v4405_v18 = vpop.f32.mrb[0].mxu0 }
  0xe0   :  { %v143_v19 = vpop.f32.mrb[1].mxu0  ;;  %v4987_v21 = vadd.f32 %v4405_v18, %v63_v17 }
  0xe1   :  { %v4983_v20 = vadd.f32 %v143_v19, %v63_v17 }
  0xe3   :  { %163 = vrot.lane.b32.xlu0 %v4983_v20, %s4862_s25  ;;  %v4408_v24 = vpop.f32.mrb[2].mxu0 }
  0xe4   :  { %v153_v25 = vpop.f32.mrb[3].mxu0  ;;  %v5011_v44 = vadd.f32 %v4408_v24, %v63_v17 }
  0xe5   :  { %v5005_v32 = vadd.f32 %v153_v25, %v63_v17 }
  0xe7   :  { %241 = vrot.lane.b32.xlu0 %v4987_v21, %s4862_s25 }
 0x155   :  { %v164_v22 = vpop.permute.xlu0 %163 }
 0x156   :  { %4410 = vmatpush3.xpose.msk.msra.mxu1 %vm165_vm2, %v164_v22 }
 0x157   :  { %4414 = vmatprep.subr.mxu1 %v4860_v12 }
 0x159   :  { %4412 = vmatmul.mubr.msk.f32.vlgmr.msra.gmra.mrb[0].mxu1 %vm165_vm2, %v4983_v20  ;;  %v242_v23 = vpop.permute.xlu0 %241 }
 0x15a   :  { %4415 = vmatpush3.xpose.msk.msra.mxu1 %vm165_vm2, %v242_v23  ;;  %4416 = vmatprep.mubr.msk.f32.mxu1 %vm4861_vm1, %v4860_v12 }
 0x15b   :  { %4419 = vmatprep.subr.mxu1 %v4860_v12 }
 0x15d   :  { %4417 = vmatmul.mubr.msk.f32.vlgmr.msra.gmra.mrb[2].mxu1 %vm165_vm2, %v4987_v21 }
 0x15e   :  { %4421 = vmatprep.mubr.msk.f32.mxu1 %vm4861_vm1, %v4860_v12 }
 0x22c   :  { %v236_v26 = vpop.f32.mrb[0].mxu1 }
 0x22d   :  { %v4413_v27 = vpop.f32.mrb[1].mxu1  ;;  %v317_v28 = vsel %vm165_vm2, %v236_v26, -inf }
 0x22e   :  { %318 = vmax.xlane.f32.xlu1 %v317_v28 }
 0x230   :  { %v313_v29 = vpop.f32.mrb[2].mxu1 }
 0x231   :  { %v4418_v30 = vpop.f32.mrb[3].mxu1  ;;  %v320_v31 = vsel %vm165_vm2, %v313_v29, -inf }
 0x232   :  { %321 = vmax.xlane.f32.xlu1 %v320_v31 }
 0x243   :  { %340 = vrot.lane.b32.xlu1 %v5005_v32, %s4863_s26 }
 0x2bb   :  { %v319_v33 = vpop.xlane.xlu1 %318 }
 0x2bc   :  { %v323_v34 = vsub.f32 %v236_v26, %v319_v33 }
 0x2be   :  { %v325_v35 = vmul.f32 1.442695, %v323_v34 }
 0x2bf   :  { %v322_v36 = vpop.xlane.xlu1 %321 }
 0x2c0   :  { %4776 = vpow2.f32 %v325_v35  ;;  %v324_v37 = vsub.f32 %v313_v29, %v322_v36 }
 0x2c2   :  { %v327_v38 = vmul.f32 1.442695, %v324_v37 }
 0x2c3   :  { %v341_v39 = vpop.permute.xlu1 %340 }
 0x2c4   :  { %4778 = vpow2.f32 %v327_v38  ;;  %4420 = vmatpush3.msra.mxu1 %v341_v39 }
 0x2c5   :  { %4429 = vmatprep.subr.mxu1 %v40_v45 }
 0x2ca   :  { %v4777_v40 = vpop.eup %4776 }
 0x2cb   :  { %v329_v41 = vsel %vm165_vm2, %v4777_v40, 0.0 }
 0x2cc   :  { %330 = vadd.xlane.f32.xlu0 %v329_v41 }
 0x2ce   :  { %v4779_v42 = vpop.eup %4778 }
 0x2cf   :  { %v332_v43 = vsel %vm165_vm2, %v4779_v42, 0.0 }
 0x2d0   :  { %333 = vadd.xlane.f32.xlu1 %v332_v43 }
 0x2e1   :  { %417 = vrot.lane.b32.xlu1 %v5011_v44, %s4863_s26 }
 0x2e2   :  { %660 = vrot.lane.b32.xlu0 %v4987_v21, %s4864_s27 }
 0x2e5   :  { %582 = vrot.lane.b32.xlu1 %v4983_v20, %s4864_s27 }
 0x2e9   :  { %580 = vrot.lane.b32.xlu1 %v4983_v20, %s4865_s28 }
 0x2ed   :  { %658 = vrot.lane.b32.xlu1 %v4987_v21, %s4865_s28 }
 0x359   :  { %v331_v46 = vpop.xlane.xlu0 %330 }
 0x35a   :  { %4780 = vrcp.f32 %v331_v46 }
 0x35d   :  { %v334_v47 = vpop.xlane.xlu1 %333  ;;  %v661_v58 = vpop.permute.xlu0 %660 }
 0x35e   :  { %4782 = vrcp.f32 %v334_v47 }
 0x361   :  { %v418_v48 = vpop.permute.xlu1 %417 }
 0x362   :  { %4425 = vmatpush3.msra.mxu0 %v418_v48 }
 0x363   :  { %4434 = vmatprep.subr.mxu0 %v4860_v12 }
 0x364   :  { %v4781_v49 = vpop.eup %4780 }
 0x365   :  { %v337_v50 = vmul.f32 %v4781_v49, %v4777_v40  ;;  %v583_v52 = vpop.permute.xlu1 %582 }
 0x367   :  { %4422 = vmatmul.mubr.msk.f32.vlgmr.msra.gmra.mrb[4].mxu1 %vm165_vm2, %v337_v50 }
 0x368   :  { %v4783_v51 = vpop.eup %4782  ;;  %4430 = vmatpush3.msra.mxu1 %v40_v45  ;;  %v41_v45 = vld [vmem:[%s5508_s3 + $0x8] sm:$0xff] }
 0x369   :  { %v338_v53 = vmul.f32 %v4783_v51, %v4779_v42  ;;  %4439 = vmatprep.subr.mxu1 %v4860_v12  ;;  %v581_v54 = vpop.permute.xlu1 %580 }
 0x36b   :  { %4427 = vmatmul.mubr.msk.f32.vlgmr.msra.gmra.mrb[4].mxu0 %vm165_vm2, %v338_v53 }
 0x36c   :  { %4435 = vmatpush3.xpose.msk.msra.mxu0 %vm165_vm2, %v583_v52  ;;  %4436 = vmatprep.mubr.msk.f32.mxu0 %vm4861_vm1, %v4860_v12 }
 0x36d   :  { %4444 = vmatprep.subr.mxu0 %v4860_v12  ;;  %v659_v60 = vpop.permute.xlu1 %658 }
 0x36f   :  { %4437 = vmatmul.mubr.msk.f32.vlgmr.msra.gmra.mrb[6].mxu0 %vm165_vm2, %v581_v54 }
 0x370   :  { %4446 = vmatprep.mubr.msk.f32.mxu0 %vm4861_vm1, %v4860_v12 }
 0x43a   :  { %v412_v55 = vpop.f32.mrb[4].mxu1 }
 0x43b   :  { %v4423_v56 = vpop.f32.mrb[5].mxu1  ;;  %4431 = vmatprep.mubr.msk.f32.mxu1 %vm165_vm2, %v412_v55 }
 0x43e   :  { %v489_v57 = vpop.f32.mrb[4].mxu0 }
 0x43f   :  { %v4428_v59 = vpop.f32.mrb[5].mxu0  ;;  %4432 = vmatmul.mubr.msk.f32.vlgmr.msra.gmra.mrb[6].mxu1 %vm165_vm2, %v489_v57 }
 0x440   :  { %4440 = vmatpush3.xpose.msk.msra.mxu1 %vm165_vm2, %v661_v58  ;;  %4441 = vmatprep.mubr.msk.f32.mxu1 %vm4861_vm1, %v4860_v12 }
 0x441   :  { %4449 = vmatprep.subr.mxu1 %v4860_v12 }
 0x442   :  { %v654_v61 = vpop.f32.mrb[6].mxu0 }
 0x443   :  { %v4438_v62 = vpop.f32.mrb[7].mxu0  ;;  %4442 = vmatmul.mubr.msk.f32.vlgmr.msra.gmra.mrb[8].mxu1 %vm165_vm2, %v659_v60  ;;  %v736_v63 = vsel %vm165_vm2, %v654_v61, -inf  ;;  %v42_v60 = vld [vmem:[%s5508_s3 + $0x10] sm:$0xff] }
 0x444   :  { %737 = vmax.xlane.f32.xlu1 %v736_v63  ;;  %4451 = vmatprep.mubr.msk.f32.mxu1 %vm4861_vm1, %v4860_v12 }
 0x455   :  { %758 = vrot.lane.b32.xlu1 %v5005_v32, %s4866_s10 }
 0x459   :  { %993 = vrot.lane.b32.xlu1 %v4983_v20, %s4867_s11 }
 0x45d   :  { %1073 = vrot.lane.b32.xlu1 %v4987_v21, %s4868_s12 }
 0x461   :  { %1071 = vrot.lane.b32.xlu1 %v4987_v21, %s4867_s11 }
 0x4d1   :  { %v738_v0 = vpop.xlane.xlu1 %737 }
 0x4d2   :  { %v742_v1 = vsub.f32 %v654_v61, %v738_v0 }
 0x4d4   :  { %v744_v2 = vmul.f32 1.442695, %v742_v1 }
 0x4d5   :  { %v759_v3 = vpop.permute.xlu1 %758 }
 0x4d6   :  { %4784 = vpow2.f32 %v744_v2  ;;  %4445 = vmatpush3.msra.mxu0 %v759_v3 }
 0x4d7   :  { %4459 = vmatprep.subr.mxu0 %v4860_v12 }
 0x4d9   :  { %v994_v18 = vpop.permute.xlu1 %993 }
 0x4dd   :  { %v1074_v24 = vpop.permute.xlu1 %1073 }
 0x4e0   :  { %v4785_v4 = vpop.eup %4784 }
 0x4e1   :  { %v748_v6 = vsel %vm165_vm2, %v4785_v4, 0.0  ;;  %v1072_v25 = vpop.permute.xlu1 %1071 }
 0x4e2   :  { %749 = vadd.xlane.f32.xlu0 %v748_v6 }
 0x4f8   :  { %995 = vrot.lane.b32.xlu0 %v4983_v20, %s4868_s12 }
 0x516   :  { %v732_v8 = vpop.f32.mrb[8].mxu1 }
 0x517   :  { %v4443_v11 = vpop.f32.mrb[9].mxu1  ;;  %v739_v13 = vsel %vm165_vm2, %v732_v8, -inf }
 0x518   :  { %740 = vmax.xlane.f32.xlu1 %v739_v13 }
 0x56f   :  { %v750_v17 = vpop.xlane.xlu0 %749 }
 0x570   :  { %4786 = vrcp.f32 %v750_v17 }
 0x573   :  { %v996_v23 = vpop.permute.xlu0 %995 }
 0x57a   :  { %v4787_v19 = vpop.eup %4786 }
 0x57b   :  { %v756_v22 = vmul.f32 %v4787_v19, %v4785_v4 }
 0x57d   :  { %4447 = vmatmul.mubr.msk.f32.vlgmr.msra.gmra.mrb[8].mxu0 %vm165_vm2, %v756_v22 }
 0x57e   :  { %4460 = vmatpush3.xpose.msk.msra.mxu0 %vm165_vm2, %v996_v23  ;;  %4461 = vmatprep.mubr.msk.f32.mxu0 %vm4861_vm1, %v4860_v12 }
 0x57f   :  { %4464 = vmatprep.subr.mxu0 %v4860_v12 }
 0x581   :  { %4462 = vmatmul.mubr.msk.f32.vlgmr.msra.gmra.mrb[10].mxu0 %vm165_vm2, %v994_v18 }
 0x582   :  { %4465 = vmatpush3.xpose.msk.msra.mxu0 %vm165_vm2, %v1074_v24  ;;  %4466 = vmatprep.mubr.msk.f32.mxu0 %vm4861_vm1, %v4860_v12 }
 0x583   :  { %4474 = vmatprep.subr.mxu0 %v4860_v12 }
 0x585   :  { %4467 = vmatmul.mubr.msk.f32.vlgmr.msra.gmra.mrb[12].mxu0 %vm165_vm2, %v1072_v25 }
 0x586   :  { %4476 = vmatprep.mubr.msk.f32.mxu0 %vm4861_vm1, %v4860_v12 }
 0x5a5   :  { %v741_v26 = vpop.xlane.xlu1 %740 }
 0x5a6   :  { %v743_v27 = vsub.f32 %v732_v8, %v741_v26 }
 0x5a8   :  { %v746_v28 = vmul.f32 1.442695, %v743_v27 }
 0x5aa   :  { %4788 = vpow2.f32 %v746_v28 }
 0x5b4   :  { %v4789_v29 = vpop.eup %4788 }
 0x5b5   :  { %v751_v30 = vsel %vm165_vm2, %v4789_v29, 0.0 }
 0x5b6   :  { %752 = vadd.xlane.f32.xlu0 %v751_v30 }
 0x5cc   :  { %834 = vrot.lane.b32.xlu0 %v5011_v44, %s4866_s10 }
 0x5d0   :  { %1247 = vrot.lane.b32.xlu0 %v5011_v44, %s4869_s13 }
 0x5d4   :  { %1408 = vrot.lane.b32.xlu0 %v4983_v20, %s4870_s14 }
 0x5d8   :  { %1486 = vrot.lane.b32.xlu0 %v4987_v21, %s4870_s14 }
 0x5dc   :  { %1406 = vrot.lane.b32.xlu0 %v4983_v20, %s4871_s15 }
 0x643   :  { %v753_v31 = vpop.xlane.xlu0 %752 }
 0x644   :  { %4790 = vrcp.f32 %v753_v31 }
 0x647   :  { %v835_v33 = vpop.permute.xlu0 %834 }
 0x648   :  { %4450 = vmatpush3.msra.mxu1 %v835_v33 }
 0x649   :  { %4454 = vmatprep.subr.mxu1 %v41_v45 }
 0x64b   :  { %v1248_v34 = vpop.permute.xlu0 %1247 }
 0x64c   :  { %4475 = vmatpush3.msra.mxu0 %v1248_v34 }
 0x64d   :  { %4484 = vmatprep.subr.mxu0 %v4860_v12 }
 0x64e   :  { %v4791_v35 = vpop.eup %4790 }
 0x64f   :  { %v757_v36 = vmul.f32 %v4791_v35, %v4789_v29  ;;  %v1409_v62 = vpop.permute.xlu0 %1408 }
 0x650   :  { %v830_v37 = vpop.f32.mrb[8].mxu0 }
 0x651   :  { %v4448_v38 = vpop.f32.mrb[9].mxu0  ;;  %4452 = vmatmul.mubr.msk.f32.vlgmr.msra.gmra.mrb[10].mxu1 %vm165_vm2, %v757_v36 }
 0x652   :  { %4456 = vmatprep.mubr.msk.f32.mxu1 %vm165_vm2, %v830_v37  ;;  %4455 = vmatpush3.msra.mxu1 %v41_v45 }
 0x653   :  { %4469 = vmatprep.subr.mxu1 %v4860_v12  ;;  %v1487_v1 = vpop.permute.xlu0 %1486 }
 0x654   :  { %v1067_v39 = vpop.f32.mrb[10].mxu0 }
 0x655   :  { %v4463_v40 = vpop.f32.mrb[11].mxu0  ;;  %v1149_v20 = vsel %vm165_vm2, %v1067_v39, -inf }
 0x656   :  { %1150 = vmax.xlane.f32.xlu1 %v1149_v20  ;;  %v43_v40 = vld [vmem:[%s5508_s3 + $0x18] sm:$0xff] }
 0x657   :  { %v1407_v3 = vpop.permute.xlu0 %1406 }
 0x658   :  { %v1145_v41 = vpop.f32.mrb[12].mxu0 }
 0x659   :  { %v4468_v42 = vpop.f32.mrb[13].mxu0  ;;  %v1152_v43 = vsel %vm165_vm2, %v1145_v41, -inf }
 0x65a   :  { %1153 = vmax.xlane.f32.xlu1 %v1152_v43 }
 0x6e3   :  { %v1151_v46 = vpop.xlane.xlu1 %1150 }
 0x6e4   :  { %v1155_v47 = vsub.f32 %v1067_v39, %v1151_v46 }
 0x6e6   :  { %v1157_v48 = vmul.f32 1.442695, %v1155_v47  ;;  %v5142_v47 = vld [vmem:[%s5509_s7] sm:$0xff] }
 0x6e7   :  { %v1154_v49 = vpop.xlane.xlu1 %1153 }
 0x6e8   :  { %4792 = vpow2.f32 %v1157_v48  ;;  %v1156_v50 = vsub.f32 %v1145_v41, %v1154_v49  ;;  %v577_v48 = vrot.slane %v5142_v47, %v4974_v15 }
 0x6ea   :  { %v1159_v51 = vmul.f32 1.442695, %v1156_v50 }
 0x6ec   :  { %4794 = vpow2.f32 %v1159_v51 }
 0x6f2   :  { %v4793_v52 = vpop.eup %4792 }
 0x6f3   :  { %v1161_v53 = vsel %vm165_vm2, %v4793_v52, 0.0 }
 0x6f4   :  { %1162 = vadd.xlane.f32.xlu1 %v1161_v53 }
 0x6f6   :  { %v4795_v54 = vpop.eup %4794 }
 0x6f7   :  { %v1164_v55 = vsel %vm165_vm2, %v4795_v54, 0.0 }
 0x6f8   :  { %1165 = vadd.xlane.f32.xlu1 %v1164_v55 }
 0x709   :  { %1171 = vrot.lane.b32.xlu1 %v5005_v32, %s4869_s13 }
 0x70d   :  { %1484 = vrot.lane.b32.xlu1 %v4987_v21, %s4871_s15 }
 0x724   :  { %v906_v56 = vpop.f32.mrb[10].mxu1 }
 0x725   :  { %v4453_v57 = vpop.f32.mrb[11].mxu1  ;;  %4457 = vmatmul.mubr.msk.f32.vlgmr.msra.gmra.mrb[6].mxu1 %vm165_vm2, %v906_v56 }
 0x726   :  { %4471 = vmatprep.mubr.msk.f32.mxu1 %vm4861_vm1, %v4860_v12 }
 0x781   :  { %v1163_v58 = vpop.xlane.xlu1 %1162 }
 0x782   :  { %4796 = vrcp.f32 %v1163_v58 }
 0x785   :  { %v1166_v59 = vpop.xlane.xlu1 %1165 }
 0x786   :  { %4798 = vrcp.f32 %v1166_v59 }
 0x789   :  { %v1172_v61 = vpop.permute.xlu1 %1171 }
 0x78a   :  { %4470 = vmatpush3.msra.mxu1 %v1172_v61 }
 0x78b   :  { %4479 = vmatprep.subr.mxu1 %v42_v60 }
 0x78c   :  { %v4797_v21 = vpop.eup %4796 }
 0x78d   :  { %v1169_v63 = vmul.f32 %v4797_v21, %v4793_v52  ;;  %v1485_v13 = vpop.permute.xlu1 %1484 }
 0x78f   :  { %4472 = vmatmul.mubr.msk.f32.vlgmr.msra.gmra.mrb[12].mxu1 %vm165_vm2, %v1169_v63 }
 0x790   :  { %v4799_v0 = vpop.eup %4798  ;;  %4480 = vmatpush3.msra.mxu1 %v42_v60 }
 0x791   :  { %v1170_v2 = vmul.f32 %v4799_v0, %v4795_v54  ;;  %4489 = vmatprep.subr.mxu1 %v4860_v12 }
 0x793   :  { %4477 = vmatmul.mubr.msk.f32.vlgmr.msra.gmra.mrb[14].mxu0 %vm165_vm2, %v1170_v2 }
 0x794   :  { %4485 = vmatpush3.xpose.msk.msra.mxu0 %vm165_vm2, %v1409_v62  ;;  %4486 = vmatprep.mubr.msk.f32.mxu0 %vm4861_vm1, %v4860_v12 }
 0x795   :  { %4494 = vmatprep.subr.mxu0 %v4860_v12 }
 0x797   :  { %4487 = vmatmul.mubr.msk.f32.vlgmr.msra.gmra.mrb[16].mxu0 %vm165_vm2, %v1407_v3  ;;  %v46_v3 = vld [vmem:[%s5510_s4 + $0x10] sm:$0xff] }
 0x798   :  { %4496 = vmatprep.mubr.msk.f32.mxu0 %vm4861_vm1, %v4860_v12 }
 0x862   :  { %v1243_v4 = vpop.f32.mrb[12].mxu1 }
 0x863   :  { %v4473_v6 = vpop.f32.mrb[13].mxu1  ;;  %4481 = vmatprep.mubr.msk.f32.mxu1 %vm165_vm2, %v1243_v4  ;;  %v47_v4 = vld [vmem:[%s5510_s4 + $0x18] sm:$0xff] }
 0x864   :  { %v4695_v6 = vpack.c.bf16 %v47_v4, %v46_v3 }
 0x866   :  { %v1319_v8 = vpop.f32.mrb[14].mxu0 }
 0x867   :  { %v4478_v11 = vpop.f32.mrb[15].mxu0  ;;  %4482 = vmatmul.mubr.msk.f32.vlgmr.msra.gmra.mrb[6].mxu1 %vm165_vm2, %v1319_v8  ;;  %v48_v8 = vld [vmem:[%s5511_s5] sm:$0xff] }
 0x868   :  { %4490 = vmatpush3.xpose.msk.msra.mxu1 %vm165_vm2, %v1487_v1  ;;  %4491 = vmatprep.mubr.msk.f32.mxu1 %vm4861_vm1, %v4860_v12  ;;  %v45_v1 = vld [vmem:[%s5510_s4 + $0x8] sm:$0xff] }
 0x869   :  { %4499 = vmatprep.subr.mxu1 %v4860_v12  ;;  %v49_v11 = vld [vmem:[%s5511_s5 + $0x8] sm:$0xff] }
 0x86a   :  { %v1480_v17 = vpop.f32.mrb[16].mxu0 }
 0x86b   :  { %v4488_v18 = vpop.f32.mrb[17].mxu0  ;;  %4492 = vmatmul.mubr.msk.f32.vlgmr.msra.gmra.mrb[14].mxu1 %vm165_vm2, %v1485_v13  ;;  %v1562_v19 = vsel %vm165_vm2, %v1480_v17, -inf  ;;  %v4699_v13 = vpack.c.bf16 %v49_v11, %v48_v8  ;;  %v4198_v8 = vld [vmem:[%s5504_s2 + $0x28] sm:$0xff] }
 0x86c   :  { %1563 = vmax.xlane.f32.xlu0 %v1562_v19  ;;  %4501 = vmatprep.mubr.msk.f32.mxu1 %vm4861_vm1, %v4860_v12 }
 0x8f9   :  { %v1564_v22 = vpop.xlane.xlu0 %1563 }
 0x8fa   :  { %v1568_v23 = vsub.f32 %v1480_v17, %v1564_v22 }
 0x8fc   :  { %v1570_v24 = vmul.f32 1.442695, %v1568_v23 }
 0x8fe   :  { %4800 = vpow2.f32 %v1570_v24 }
 0x908   :  { %v4801_v25 = vpop.eup %4800 }
 0x909   :  { %v1574_v26 = vsel %vm165_vm2, %v4801_v25, 0.0 }
 0x90a   :  { %1575 = vadd.xlane.f32.xlu0 %v1574_v26  ;;  %v1856_v26 = vsub.s32 2, %v4967_v14 }
 0x93e   :  { %v1558_v27 = vpop.f32.mrb[14].mxu1 }
 0x93f   :  { %v4493_v28 = vpop.f32.mrb[15].mxu1  ;;  %v1565_v29 = vsel %vm165_vm2, %v1558_v27, -inf }
 0x940   :  { %1566 = vmax.xlane.f32.xlu1 %v1565_v29 }
 0x951   :  { %1584 = vrot.lane.b32.xlu1 %v5005_v32, %s4872_s20 }
 0x997   :  { %v1576_v30 = vpop.xlane.xlu0 %1575 }
 0x998   :  { %4802 = vrcp.f32 %v1576_v30 }
 0x9a2   :  { %v4803_v33 = vpop.eup %4802 }
 0x9a3   :  { %v1582_v36 = vmul.f32 %v4803_v33, %v4801_v25  ;;  %v5171_v25 = vsub.s32 1, %v4967_v14  ;;  %v1857_v33 = vrot.slane %v5142_v47, %v1856_v26 }
 0x9cd   :  { %v1567_v31 = vpop.xlane.xlu1 %1566 }
 0x9ce   :  { %v1569_v34 = vsub.f32 %v1558_v27, %v1567_v31  ;;  %v1851_v27 = vrot.slane %v5142_v47, %v5171_v25 }
 0x9d0   :  { %v1572_v35 = vmul.f32 1.442695, %v1569_v34 }
 0x9d1   :  { %v1585_v37 = vpop.permute.xlu1 %1584 }
 0x9d2   :  { %4804 = vpow2.f32 %v1572_v35  ;;  %4495 = vmatpush3.msra.mxu0 %v1585_v37  ;;  %v51_v37 = vld [vmem:[%s5511_s5 + $0x18] sm:$0xff] }
 0x9d3   :  { %4497 = vmatmul.mubr.msk.f32.vlgmr.msra.gmra.mrb[18].mxu0 %vm165_vm2, %v1582_v36  ;;  %v50_v36 = vld [vmem:[%s5511_s5 + $0x10] sm:$0xff] }
 0x9dc   :  { %v4805_v38 = vpop.eup %4804 }
 0x9dd   :  { %v1577_v39 = vsel %vm165_vm2, %v4805_v38, 0.0 }
 0x9de   :  { %1578 = vadd.xlane.f32.xlu0 %v1577_v39 }
 0x9f4   :  { %1660 = vrot.lane.b32.xlu0 %v5011_v44, %s4872_s20 }
 0xa6b   :  { %v1579_v32 = vpop.xlane.xlu0 %1578 }
 0xa6c   :  { %4806 = vrcp.f32 %v1579_v32  ;;  %v4703_v32 = vpack.c.bf16 %v51_v37, %v50_v36 }
 0xa6f   :  { %v1661_v20 = vpop.permute.xlu0 %1660 }
 0xa70   :  { %4500 = vmatpush3.msra.mxu1 %v1661_v20  ;;  %v53_v20 = vld [vmem:[%s5511_s5 + $0x28] sm:$0xff] }
 0xa71   :  { %4504 = vmatprep.subr.mxu1 %v43_v40 }
 0xa76   :  { %v4807_v41 = vpop.eup %4806 }
 0xa77   :  { %v1583_v42 = vmul.f32 %v4807_v41, %v4805_v38 }
 0xa79   :  { %4502 = vmatmul.mubr.msk.f32.vlgmr.msra.gmra.mrb[16].mxu1 %vm165_vm2, %v1583_v42  ;;  %v54_v42 = vld [vmem:[%s5511_s5 + $0x30] sm:$0xff] }
 0xa7a   :  { %4505 = vmatpush3.msra.mxu1 %v43_v40  ;;  %v52_v40 = vld [vmem:[%s5511_s5 + $0x20] sm:$0xff] }
 0xa7b   :  { %v4707_v41 = vpack.c.bf16 %v53_v20, %v52_v40 }
 0xaa6   :  { %v1656_v43 = vpop.f32.mrb[18].mxu0 }
 0xaa7   :  { %v4498_v45 = vpop.f32.mrb[19].mxu0  ;;  %4506 = vmatprep.mubr.msk.f32.mxu1 %vm165_vm2, %v1656_v43  ;;  %v55_v43 = vld [vmem:[%s5511_s5 + $0x38] sm:$0xff] }
 0xaa8   :  { %v4711_v45 = vpack.c.bf16 %v55_v43, %v54_v42 }
 0xb4c   :  { %v1732_v46 = vpop.f32.mrb[16].mxu1 }
 0xb4d   :  { %v4503_v44 = vpop.f32.mrb[17].mxu1  ;;  %4507 = vmatmul.mubr.msk.f32.vlgmr.msra.gmra.mrb[6].mxu1 %vm165_vm2, %v1732_v46  ;;  %v1863_v46 = vrot.slane %v4979_v16, %v5171_v25 }
 0xc20   :  { %v4508_v49 = vpop.f32.mrb[6].mxu1 }
 0xc21   :  { %v4747_v50 = vadd.f32 %v4508_v49, %v577_v48  ;;  %v1808_v51 = vpop.f32.mrb[7].mxu1 }
 0xc22   :  { %v4748_v52 = vadd.f32 %v1808_v51, %v577_v48 }
 0xc23   :  { %v1820_v53 = vadd.f32 %v4747_v50, %v4950_v9 }
 0xc24   :  { %v1819_v54 = vadd.f32 %v4748_v52, %v4938_v5  ;;  %v44_v5 = vld [vmem:[%s5510_s4] sm:$0xff] }
 0xc25   :  { %v1824_v55 = vsel %vm64_vm0, %v1820_v53, 0.0  ;;  %v4691_v2 = vpack.c.bf16 %v45_v1, %v44_v5 }
 0xc26   :  { %1825 = vadd.xlane.f32.xlu0 %v1824_v55  ;;  %v1821_v56 = vsel %vm64_vm0, %v1819_v54, 0.0 }
 0xc27   :  { %1822 = vadd.xlane.f32.xlu1 %v1821_v56  ;;  %4692 = vmatprep.subr.bf16.mxu1 %v4691_v2 }
 0xc28   :  { %4694 = vmatpush3.bf16.msra.mxu1 %v4691_v2 }
 0xc29   :  { %4696 = vmatprep.subr.bf16.mxu1 %v4695_v6 }
 0xc2c   :  { %4698 = vmatpush3.bf16.msra.mxu1 %v4695_v6  ;;  %v4197_v6 = vld [vmem:[%s5504_s2 + $0x20] sm:$0xff] }
 0xc2d   :  { %4700 = vmatprep.subr.bf16.mxu1 %v4699_v13  ;;  %v4715_v11 = vpack.c.bf16 %v4198_v8, %v4197_v6 }
 0xc2f   :  { %4716 = vmatprep.subr.bf16.mxu0 %v4715_v11 }
 0xc30   :  { %4718 = vmatpush3.bf16.msra.mxu0 %v4715_v11 }
 0xcb3   :  { %v1826_v57 = vpop.xlane.xlu0 %1825 }
 0xcb4   :  { %v1829_v58 = vmul.f32 0.03125, %v1826_v57  ;;  %v1823_v59 = vpop.xlane.xlu1 %1822 }
 0xcb5   :  { %v1828_v60 = vmul.f32 0.03125, %v1823_v59 }
 0xcb6   :  { %v1831_v61 = vsub.f32 %v1820_v53, %v1829_v58  ;;  %v1949_v53 = vsub.s32 3, %v4967_v14 }
 0xcb7   :  { %v1830_v62 = vsub.f32 %v1819_v54, %v1828_v60 }
 0xcb8   :  { %v1833_v21 = vmul.f32 %v1831_v61, %v1831_v61  ;;  %v1950_v16 = vrot.slane %v5142_v47, %v1949_v53 }
 0xcb9   :  { %v1832_v63 = vmul.f32 %v1830_v62, %v1830_v62 }
 0xcba   :  { %v1837_v0 = vsel %vm64_vm0, %v1833_v21, 0.0 }
 0xcbb   :  { %1838 = vadd.xlane.f32.xlu0 %v1837_v0  ;;  %v1834_v9 = vsel %vm64_vm0, %v1832_v63, 0.0 }
 0xcbc   :  { %1835 = vadd.xlane.f32.xlu1 %v1834_v9 }
 0xd48   :  { %v1839_v17 = vpop.xlane.xlu0 %1838 }
 0xd49   :  { %v1841_v18 = vmul.f32 0.03125, %v1839_v17  ;;  %v1836_v19 = vpop.xlane.xlu1 %1835  ;;  %v4200_v17 = vld [vmem:[%s5504_s2 + $0x38] sm:$0xff] }
 0xd4a   :  { %v1840_v22 = vmul.f32 0.03125, %v1836_v19 }
 0xd4b   :  { %v1843_v23 = vadd.f32 1e-05, %v1841_v18 }
 0xd4c   :  { %v1842_v24 = vadd.f32 1e-05, %v1840_v22 }
 0xd4d   :  { %4808 = vrsqrt.f32 %v1843_v23 }
 0xd4e   :  { %4810 = vrsqrt.f32 %v1842_v24 }
 0xd57   :  { %v4809_v28 = vpop.eup %4808 }
 0xd58   :  { %v4811_v29 = vpop.eup %4810  ;;  %v1847_v30 = vmul.f32 %v4809_v28, %v1831_v61 }
 0xd59   :  { %v1846_v31 = vmul.f32 %v4811_v29, %v1830_v62  ;;  %v2063_v29 = vsub.s32 4, %v4967_v14 }
 0xd5a   :  { %v1853_v34 = vmul.f32 %v1851_v27, %v1847_v30  ;;  %v2069_v30 = vsub.s32 5, %v4967_v14 }
 0xd5b   :  { %v1852_v35 = vmul.f32 %v1851_v27, %v1846_v31  ;;  %v2064_v31 = vrot.slane %v5142_v47, %v2063_v29 }
 0xd5c   :  { %v1859_v39 = vadd.f32 %v1857_v33, %v1853_v34  ;;  %v2070_v36 = vrot.slane %v5142_v47, %v2069_v30 }
 0xd5d   :  { %v1858_v38 = vadd.f32 %v1857_v33, %v1852_v35 }
 0xd5f   :  { %4517 = vmatprep.mubr.msk.f32.mxu1 %vm64_vm0, %v1858_v38 }
 0xd60   :  { %4518 = vmatmul.mubr.msk.f32.vlgmr.msra.gmra.mrb[18].mxu1 %vm64_vm0, %v1859_v39 }
 0xd61   :  { %4702 = vmatpush3.bf16.msra.mxu1 %v4699_v13  ;;  %v4199_v13 = vld [vmem:[%s5504_s2 + $0x30] sm:$0xff] }
 0xd62   :  { %4704 = vmatprep.subr.bf16.mxu1 %v4703_v32  ;;  %v4719_v18 = vpack.c.bf16 %v4200_v17, %v4199_v13 }
 0xd64   :  { %4720 = vmatprep.subr.bf16.mxu0 %v4719_v18 }
 0xd65   :  { %4706 = vmatpush3.bf16.msra.mxu1 %v4703_v32  ;;  %4722 = vmatpush3.bf16.msra.mxu0 %v4719_v18 }
 0xd66   :  { %4708 = vmatprep.subr.bf16.mxu1 %v4707_v41  ;;  %4553 = vmatprep.subr.mxu0 %v4860_v12 }
 0xd69   :  { %4710 = vmatpush3.bf16.msra.mxu1 %v4707_v41 }
 0xd6a   :  { %4712 = vmatprep.subr.bf16.mxu1 %v4711_v45 }
 0xd6d   :  { %4714 = vmatpush3.bf16.msra.mxu1 %v4711_v45 }
 0xd6e   :  { %4558 = vmatprep.subr.mxu1 %v4860_v12 }
 0xe33   :  { %v4519_v44 = vpop.f32.mrb[18].mxu1 }
 0xe34   :  { %v1942_v48 = vadd.f32 %v4519_v44, %v1863_v46  ;;  %v1936_v49 = vpop.f32.mrb[19].mxu1 }
 0xe35   :  { %v1937_v50 = vadd.f32 %v1936_v49, %v1863_v46 }
 0xe36   :  { %v1946_v52 = vmax.f32 %v1942_v48, 0.0 }
 0xe37   :  { %v1945_v51 = vmax.f32 %v1937_v50, 0.0 }
 0xe39   :  { %4536 = vmatprep.mubr.msk.f32.mxu1 %vm1951_vm3, %v1945_v51 }
 0xe3a   :  { %4537 = vmatmul.mubr.msk.f32.vlgmr.msra.gmra.mrb[20].mxu1 %vm1951_vm3, %v1946_v52 }
 0xe3b   :  { %4560 = vmatprep.mubr.msk.f32.mxu1 %vm4861_vm1, %v4860_v12 }
 0xf0d   :  { %v4538_v54 = vpop.f32.mrb[20].mxu1 }
 0xf0e   :  { %v2030_v55 = vadd.f32 %v4538_v54, %v1950_v16  ;;  %v2024_v56 = vpop.f32.mrb[21].mxu1 }
 0xf0f   :  { %v2025_v57 = vadd.f32 %v2024_v56, %v1950_v16 }
 0xf10   :  { %v2034_v58 = vadd.f32 %v2030_v55, %v1859_v39 }
 0xf11   :  { %v2033_v59 = vadd.f32 %v2025_v57, %v1858_v38 }
 0xf12   :  { %v2038_v60 = vsel %vm64_vm0, %v2034_v58, 0.0 }
 0xf13   :  { %2039 = vadd.xlane.f32.xlu0 %v2038_v60  ;;  %v2035_v61 = vsel %vm64_vm0, %v2033_v59, 0.0 }
 0xf14   :  { %2036 = vadd.xlane.f32.xlu1 %v2035_v61 }
 0xfa0   :  { %v2040_v62 = vpop.xlane.xlu0 %2039 }
 0xfa1   :  { %v2042_v21 = vmul.f32 0.03125, %v2040_v62  ;;  %v2037_v63 = vpop.xlane.xlu1 %2036 }
 0xfa2   :  { %v2041_v0 = vmul.f32 0.03125, %v2037_v63 }
 0xfa3   :  { %v2044_v9 = vsub.f32 %v2034_v58, %v2042_v21 }
 0xfa4   :  { %v2043_v5 = vsub.f32 %v2033_v59, %v2041_v0 }
 0xfa5   :  { %v2046_v1 = vmul.f32 %v2044_v9, %v2044_v9 }
 0xfa6   :  { %v2045_v2 = vmul.f32 %v2043_v5, %v2043_v5 }
 0xfa7   :  { %v2050_v3 = vsel %vm64_vm0, %v2046_v1, 0.0 }
 0xfa8   :  { %2051 = vadd.xlane.f32.xlu0 %v2050_v3  ;;  %v2047_v4 = vsel %vm64_vm0, %v2045_v2, 0.0 }
 0xfa9   :  { %2048 = vadd.xlane.f32.xlu1 %v2047_v4  ;;  %v4201_v4 = vld [vmem:[%s5508_s3 + $0x20] sm:$0xff] }
0x1035   :  { %v2052_v19 = vpop.xlane.xlu0 %2051 }
0x1036   :  { %v2054_v22 = vmul.f32 0.03125, %v2052_v19  ;;  %v2049_v23 = vpop.xlane.xlu1 %2048 }
0x1037   :  { %v2053_v24 = vmul.f32 0.03125, %v2049_v23 }
0x1038   :  { %v2056_v27 = vadd.f32 1e-05, %v2054_v22 }
0x1039   :  { %v2055_v28 = vadd.f32 1e-05, %v2053_v24 }
0x103a   :  { %4812 = vrsqrt.f32 %v2056_v27 }
0x103b   :  { %4814 = vrsqrt.f32 %v2055_v28 }
0x1044   :  { %v4813_v33 = vpop.eup %4812 }
0x1045   :  { %v4815_v34 = vpop.eup %4814  ;;  %v2060_v35 = vmul.f32 %v4813_v33, %v2044_v9 }
0x1046   :  { %v2059_v37 = vmul.f32 %v4815_v34, %v2043_v5 }
0x1047   :  { %v2066_v38 = vmul.f32 %v2064_v31, %v2060_v35 }
0x1048   :  { %v2065_v39 = vmul.f32 %v2064_v31, %v2059_v37 }
0x1049   :  { %v5235_v32 = vadd.f32 %v2070_v36, %v2066_v38 }
0x104a   :  { %v5237_v40 = vadd.f32 %v2070_v36, %v2065_v39 }
0x104b   :  { %v2102_v41 = vadd.f32 %v5235_v32, %v4955_v10 }
0x104c   :  { %v2101_v20 = vadd.f32 %v5237_v40, %v4943_v7  ;;  %v5254_v7 = vld [vmem:[%s5507_s6 + $0x2] sm:$0x3] }
0x104d   :  { %v2106_v10 = vrot.slane %v5254_v7, %v4974_v15 }
0x104e   :  { %4547 = vmatprep.mubr.msk.f32.mxu0 %vm64_vm0, %v2101_v20 }
0x104f   :  { %4548 = vmatmul.mubr.msk.f32.vlgmr.msra.gmra.mrb[20].mxu0 %vm64_vm0, %v2102_v41 }
0x1050   :  { %4550 = vmatprep.mubr.msk.f32.mxu0 %vm64_vm0, %v5237_v40 }
0x1053   :  { %4551 = vmatmul.mubr.msk.f32.gmra.mrb[22].mxu0 %vm64_vm0, %v5235_v32 }
0x1054   :  { %4555 = vmatprep.mubr.msk.f32.mxu0 %vm4861_vm1, %v4860_v12 }
0x1122   :  { %v4549_v47 = vpop.f32.mrb[20].mxu0 }
0x1123   :  { %v5258_v42 = vadd.f32 %v4549_v47, %v2106_v10  ;;  %v2185_v43 = vpop.f32.mrb[21].mxu0 }
0x1124   :  { %v5260_v45 = vadd.f32 %v2185_v43, %v2106_v10 }
0x1125   :  { %2282 = vrot.lane.b32.xlu0 %v5258_v42, %s4862_s25 }
0x1126   :  { %v4552_v46 = vpop.f32.mrb[22].mxu0  ;;  %2205 = vrot.lane.b32.xlu1 %v5260_v45, %s4862_s25 }
0x1127   :  { %v5266_v44 = vadd.f32 %v4552_v46, %v2106_v10  ;;  %v2195_v48 = vpop.f32.mrb[23].mxu0 }
0x1128   :  { %v5268_v49 = vadd.f32 %v2195_v48, %v2106_v10 }
0x1197   :  { %v2283_v50 = vpop.permute.xlu0 %2282 }
0x1198   :  { %4559 = vmatpush3.xpose.msk.msra.mxu1 %vm165_vm2, %v2283_v50  ;;  %v2206_v51 = vpop.permute.xlu1 %2205 }
0x1199   :  { %4554 = vmatpush3.xpose.msk.msra.mxu0 %vm165_vm2, %v2206_v51  ;;  %4568 = vmatprep.subr.mxu1 %v4860_v12 }
0x119a   :  { %4563 = vmatprep.subr.mxu0 %v4860_v12 }
0x119b   :  { %4561 = vmatmul.mubr.msk.f32.vlgmr.msra.gmra.mrb[22].mxu1 %vm165_vm2, %v5258_v42 }
0x119c   :  { %4556 = vmatmul.mubr.msk.f32.vlgmr.msra.gmra.mrb[24].mxu0 %vm165_vm2, %v5260_v45  ;;  %4570 = vmatprep.mubr.msk.f32.mxu1 %vm4861_vm1, %v4860_v12 }
0x119d   :  { %4565 = vmatprep.mubr.msk.f32.mxu0 %vm4861_vm1, %v4860_v12 }
0x126e   :  { %v2354_v52 = vpop.f32.mrb[22].mxu1 }
0x126f   :  { %v2277_v16 = vpop.f32.mrb[24].mxu0  ;;  %v4562_v54 = vpop.f32.mrb[23].mxu1  ;;  %v2361_v55 = vsel %vm165_vm2, %v2354_v52, -inf }
0x1270   :  { %2362 = vmax.xlane.f32.xlu0 %v2361_v55  ;;  %v4557_v56 = vpop.f32.mrb[25].mxu0  ;;  %v2358_v57 = vsel %vm165_vm2, %v2277_v16, -inf }
0x1271   :  { %2359 = vmax.xlane.f32.xlu1 %v2358_v57 }
0x12fd   :  { %v2363_v58 = vpop.xlane.xlu0 %2362 }
0x12fe   :  { %v2365_v59 = vsub.f32 %v2354_v52, %v2363_v58  ;;  %v2360_v60 = vpop.xlane.xlu1 %2359 }
0x12ff   :  { %v2364_v61 = vsub.f32 %v2277_v16, %v2360_v60 }
0x1300   :  { %v2368_v62 = vmul.f32 1.442695, %v2365_v59 }
0x1301   :  { %v2366_v21 = vmul.f32 1.442695, %v2364_v61 }
0x1302   :  { %4816 = vpow2.f32 %v2368_v62 }
0x1303   :  { %4818 = vpow2.f32 %v2366_v21 }
0x130c   :  { %v4817_v63 = vpop.eup %4816 }
0x130d   :  { %v4819_v0 = vpop.eup %4818  ;;  %v2373_v9 = vsel %vm165_vm2, %v4817_v63, 0.0 }
0x130e   :  { %2374 = vadd.xlane.f32.xlu0 %v2373_v9  ;;  %v2370_v5 = vsel %vm165_vm2, %v4819_v0, 0.0 }
0x130f   :  { %2371 = vadd.xlane.f32.xlu1 %v2370_v5 }
0x1320   :  { %2381 = vrot.lane.b32.xlu1 %v5268_v49, %s4863_s26 }
0x1324   :  { %2458 = vrot.lane.b32.xlu0 %v5266_v44, %s4863_s26  ;;  %2623 = vrot.lane.b32.xlu1 %v5260_v45, %s4864_s27 }
0x1328   :  { %2701 = vrot.lane.b32.xlu0 %v5258_v42, %s4864_s27  ;;  %2621 = vrot.lane.b32.xlu1 %v5260_v45, %s4865_s28 }
0x132c   :  { %2699 = vrot.lane.b32.xlu1 %v5258_v42, %s4865_s28 }
0x1330   :  { %3036 = vrot.lane.b32.xlu1 %v5260_v45, %s4868_s12 }
0x139b   :  { %v2375_v1 = vpop.xlane.xlu0 %2374 }
0x139c   :  { %4820 = vrcp.f32 %v2375_v1  ;;  %v2372_v2 = vpop.xlane.xlu1 %2371 }
0x139d   :  { %4822 = vrcp.f32 %v2372_v2 }
0x139f   :  { %v2459_v3 = vpop.permute.xlu0 %2458 }
0x13a0   :  { %4569 = vmatpush3.msra.mxu1 %v2459_v3  ;;  %v2382_v6 = vpop.permute.xlu1 %2381 }
0x13a1   :  { %4564 = vmatpush3.msra.mxu0 %v2382_v6  ;;  %4578 = vmatprep.subr.mxu1 %v4860_v12  ;;  %v4202_v6 = vld [vmem:[%s5508_s3 + $0x28] sm:$0xff] }
0x13a2   :  { %4573 = vmatprep.subr.mxu0 %v4201_v4 }
0x13a3   :  { %v2702_v28 = vpop.permute.xlu0 %2701 }
0x13a4   :  { %v2624_v11 = vpop.permute.xlu1 %2623 }
0x13a6   :  { %v4821_v8 = vpop.eup %4820 }
0x13a7   :  { %v4823_v13 = vpop.eup %4822  ;;  %v2379_v17 = vmul.f32 %v4821_v8, %v4817_v63 }
0x13a8   :  { %v2378_v18 = vmul.f32 %v4823_v13, %v4819_v0  ;;  %v2622_v19 = vpop.permute.xlu1 %2621 }
0x13a9   :  { %4571 = vmatmul.mubr.msk.f32.vlgmr.msra.gmra.mrb[24].mxu1 %vm165_vm2, %v2379_v17 }
0x13aa   :  { %4579 = vmatpush3.xpose.msk.msra.mxu1 %vm165_vm2, %v2624_v11  ;;  %4566 = vmatmul.mubr.msk.f32.vlgmr.msra.gmra.mrb[26].mxu0 %vm165_vm2, %v2378_v18 }
0x13ab   :  { %4580 = vmatprep.mubr.msk.f32.mxu1 %vm4861_vm1, %v4860_v12  ;;  %4574 = vmatpush3.msra.mxu0 %v4201_v4 }
0x13ac   :  { %4583 = vmatprep.subr.mxu0 %v4860_v12  ;;  %4588 = vmatprep.subr.mxu1 %v4860_v12  ;;  %v2700_v35 = vpop.permute.xlu1 %2699 }
0x13ad   :  { %4581 = vmatmul.mubr.msk.f32.vlgmr.msra.gmra.mrb[26].mxu1 %vm165_vm2, %v2622_v19 }
0x13ae   :  { %4590 = vmatprep.mubr.msk.f32.mxu1 %vm4861_vm1, %v4860_v12 }
0x13b0   :  { %v3037_v46 = vpop.permute.xlu1 %3036 }
0x147c   :  { %v2530_v22 = vpop.f32.mrb[24].mxu1 }
0x147d   :  { %v2453_v23 = vpop.f32.mrb[26].mxu0  ;;  %v4572_v24 = vpop.f32.mrb[25].mxu1 }
0x147e   :  { %v4567_v27 = vpop.f32.mrb[27].mxu0  ;;  %4575 = vmatprep.mubr.msk.f32.mxu0 %vm165_vm2, %v2453_v23 }
0x147f   :  { %4576 = vmatmul.mubr.msk.f32.vlgmr.msra.gmra.mrb[28].mxu0 %vm165_vm2, %v2530_v22 }
0x1480   :  { %4584 = vmatpush3.xpose.msk.msra.mxu0 %vm165_vm2, %v2702_v28  ;;  %v2695_v31 = vpop.f32.mrb[26].mxu1  ;;  %4585 = vmatprep.mubr.msk.f32.mxu0 %vm4861_vm1, %v4860_v12 }
0x1481   :  { %v4582_v33 = vpop.f32.mrb[27].mxu1  ;;  %v2777_v34 = vsel %vm165_vm2, %v2695_v31, -inf  ;;  %4593 = vmatprep.subr.mxu0 %v4860_v12 }
0x1482   :  { %2778 = vmax.xlane.f32.xlu0 %v2777_v34 }
0x1483   :  { %4586 = vmatmul.mubr.msk.f32.vlgmr.msra.gmra.mrb[30].mxu0 %vm165_vm2, %v2700_v35  ;;  %v4203_v35 = vld [vmem:[%s5508_s3 + $0x30] sm:$0xff] }
0x1484   :  { %4595 = vmatprep.mubr.msk.f32.mxu0 %vm4861_vm1, %v4860_v12 }
0x1498   :  { %2799 = vrot.lane.b32.xlu0 %v5268_v49, %s4866_s10 }
0x149c   :  { %3034 = vrot.lane.b32.xlu0 %v5260_v45, %s4867_s11 }
0x14a0   :  { %3112 = vrot.lane.b32.xlu0 %v5258_v42, %s4867_s11 }
0x150f   :  { %v2779_v36 = vpop.xlane.xlu0 %2778 }
0x1510   :  { %v2783_v37 = vsub.f32 %v2695_v31, %v2779_v36 }
0x1512   :  { %v2785_v38 = vmul.f32 1.442695, %v2783_v37 }
0x1513   :  { %v2800_v39 = vpop.permute.xlu0 %2799 }
0x1514   :  { %4824 = vpow2.f32 %v2785_v38  ;;  %4589 = vmatpush3.msra.mxu1 %v2800_v39 }
0x1515   :  { %4603 = vmatprep.subr.mxu1 %v4860_v12 }
0x1517   :  { %v3035_v52 = vpop.permute.xlu0 %3034 }
0x151b   :  { %v3113_v54 = vpop.permute.xlu0 %3112 }
0x151e   :  { %v4825_v20 = vpop.eup %4824 }
0x151f   :  { %v2789_v41 = vsel %vm165_vm2, %v4825_v20, 0.0 }
0x1520   :  { %2790 = vadd.xlane.f32.xlu1 %v2789_v41 }
0x1531   :  { %3114 = vrot.lane.b32.xlu1 %v5258_v42, %s4868_s12 }
0x1556   :  { %v2773_v10 = vpop.f32.mrb[30].mxu0 }
0x1557   :  { %v4587_v47 = vpop.f32.mrb[31].mxu0  ;;  %v2780_v43 = vsel %vm165_vm2, %v2773_v10, -inf }
0x1558   :  { %2781 = vmax.xlane.f32.xlu1 %v2780_v43 }
0x15ad   :  { %v2791_v48 = vpop.xlane.xlu1 %2790 }
0x15ae   :  { %4826 = vrcp.f32 %v2791_v48 }
0x15b1   :  { %v3115_v16 = vpop.permute.xlu1 %3114 }
0x15b8   :  { %v4827_v50 = vpop.eup %4826 }
0x15b9   :  { %v2797_v51 = vmul.f32 %v4827_v50, %v4825_v20 }
0x15bb   :  { %4591 = vmatmul.mubr.msk.f32.vlgmr.msra.gmra.mrb[28].mxu1 %vm165_vm2, %v2797_v51 }
0x15bc   :  { %4604 = vmatpush3.xpose.msk.msra.mxu1 %vm165_vm2, %v3037_v46  ;;  %4605 = vmatprep.mubr.msk.f32.mxu1 %vm4861_vm1, %v4860_v12 }
0x15bd   :  { %4608 = vmatprep.subr.mxu1 %v4860_v12 }
0x15bf   :  { %4606 = vmatmul.mubr.msk.f32.vlgmr.msra.gmra.mrb[30].mxu1 %vm165_vm2, %v3035_v52 }
0x15c0   :  { %4609 = vmatpush3.xpose.msk.msra.mxu1 %vm165_vm2, %v3115_v16  ;;  %4610 = vmatprep.mubr.msk.f32.mxu1 %vm4861_vm1, %v4860_v12 }
0x15c1   :  { %4618 = vmatprep.subr.mxu1 %v4860_v12 }
0x15c3   :  { %4611 = vmatmul.mubr.msk.f32.vlgmr.msra.gmra.mrb[32].mxu1 %vm165_vm2, %v3113_v54 }
0x15c4   :  { %4620 = vmatprep.mubr.msk.f32.mxu1 %vm4861_vm1, %v4860_v12 }
0x15e5   :  { %v2782_v55 = vpop.xlane.xlu1 %2781 }
0x15e6   :  { %v2784_v56 = vsub.f32 %v2773_v10, %v2782_v55 }
0x15e8   :  { %v2787_v57 = vmul.f32 1.442695, %v2784_v56 }
0x15ea   :  { %4828 = vpow2.f32 %v2787_v57 }
0x15f4   :  { %v4829_v58 = vpop.eup %4828 }
0x15f5   :  { %v2792_v59 = vsel %vm165_vm2, %v4829_v58, 0.0 }
0x15f6   :  { %2793 = vadd.xlane.f32.xlu0 %v2792_v59 }
0x160c   :  { %2875 = vrot.lane.b32.xlu0 %v5266_v44, %s4866_s10 }
0x1610   :  { %3288 = vrot.lane.b32.xlu0 %v5266_v44, %s4869_s13 }
0x1614   :  { %3449 = vrot.lane.b32.xlu0 %v5260_v45, %s4870_s14 }
0x1618   :  { %3527 = vrot.lane.b32.xlu0 %v5258_v42, %s4870_s14 }
0x161c   :  { %3447 = vrot.lane.b32.xlu0 %v5260_v45, %s4871_s15 }
0x1683   :  { %v2794_v60 = vpop.xlane.xlu0 %2793 }
0x1684   :  { %4830 = vrcp.f32 %v2794_v60 }
0x1687   :  { %v2876_v61 = vpop.permute.xlu0 %2875 }
0x1688   :  { %4594 = vmatpush3.msra.mxu0 %v2876_v61 }
0x1689   :  { %4598 = vmatprep.subr.mxu0 %v4202_v6 }
0x168b   :  { %v3289_v62 = vpop.permute.xlu0 %3288 }
0x168c   :  { %4619 = vmatpush3.msra.mxu1 %v3289_v62 }
0x168d   :  { %4628 = vmatprep.subr.mxu1 %v4860_v12 }
0x168e   :  { %v4831_v21 = vpop.eup %4830  ;;  %v2871_v63 = vpop.f32.mrb[28].mxu1 }
0x168f   :  { %v2798_v0 = vmul.f32 %v4831_v21, %v4829_v58  ;;  %v4592_v9 = vpop.f32.mrb[29].mxu1  ;;  %v3450_v37 = vpop.permute.xlu0 %3449 }
0x1691   :  { %4596 = vmatmul.mubr.msk.f32.vlgmr.msra.gmra.mrb[32].mxu0 %vm165_vm2, %v2798_v0 }
0x1692   :  { %4600 = vmatprep.mubr.msk.f32.mxu0 %vm165_vm2, %v2871_v63  ;;  %v3108_v5 = vpop.f32.mrb[30].mxu1  ;;  %4599 = vmatpush3.msra.mxu0 %v4202_v6 }
0x1693   :  { %v4607_v1 = vpop.f32.mrb[31].mxu1  ;;  %v3190_v45 = vsel %vm165_vm2, %v3108_v5, -inf  ;;  %4613 = vmatprep.subr.mxu0 %v4860_v12  ;;  %v3528_v20 = vpop.permute.xlu0 %3527 }
0x1694   :  { %3191 = vmax.xlane.f32.xlu1 %v3190_v45 }
0x1696   :  { %v3186_v2 = vpop.f32.mrb[32].mxu1 }
0x1697   :  { %v4612_v3 = vpop.f32.mrb[33].mxu1  ;;  %v3193_v4 = vsel %vm165_vm2, %v3186_v2, -inf  ;;  %v3448_v10 = vpop.permute.xlu0 %3447 }
0x1698   :  { %3194 = vmax.xlane.f32.xlu1 %v3193_v4 }
0x1721   :  { %v3192_v8 = vpop.xlane.xlu1 %3191 }
0x1722   :  { %v3196_v11 = vsub.f32 %v3108_v5, %v3192_v8 }
0x1724   :  { %v3198_v13 = vmul.f32 1.442695, %v3196_v11 }
0x1725   :  { %v3195_v17 = vpop.xlane.xlu1 %3194 }
0x1726   :  { %4832 = vpow2.f32 %v3198_v13  ;;  %v3197_v18 = vsub.f32 %v3186_v2, %v3195_v17  ;;  %v4204_v2 = vld [vmem:[%s5508_s3 + $0x38] sm:$0xff]  ;;  %v5417_v17 = vld [vmem:[%s5509_s7 + $0x8] sm:$0xff] }
0x1728   :  { %v3200_v19 = vmul.f32 1.442695, %v3197_v18  ;;  %v2618_v18 = vrot.slane %v5417_v17, %v4974_v15 }
0x172a   :  { %4834 = vpow2.f32 %v3200_v19 }
0x1730   :  { %v4833_v22 = vpop.eup %4832 }
0x1731   :  { %v3202_v23 = vsel %vm165_vm2, %v4833_v22, 0.0 }
0x1732   :  { %3203 = vadd.xlane.f32.xlu1 %v3202_v23 }
0x1734   :  { %v4835_v24 = vpop.eup %4834 }
0x1735   :  { %v3205_v27 = vsel %vm165_vm2, %v4835_v24, 0.0 }
0x1736   :  { %3206 = vadd.xlane.f32.xlu1 %v3205_v27 }
0x1747   :  { %3212 = vrot.lane.b32.xlu1 %v5268_v49, %s4869_s13 }
0x174b   :  { %3525 = vrot.lane.b32.xlu1 %v5258_v42, %s4871_s15 }
0x1764   :  { %v2947_v28 = vpop.f32.mrb[32].mxu0 }
0x1765   :  { %v4597_v31 = vpop.f32.mrb[33].mxu0  ;;  %4601 = vmatmul.mubr.msk.f32.vlgmr.msra.gmra.mrb[28].mxu0 %vm165_vm2, %v2947_v28 }
0x1766   :  { %4615 = vmatprep.mubr.msk.f32.mxu0 %vm4861_vm1, %v4860_v12 }
0x17bf   :  { %v3204_v33 = vpop.xlane.xlu1 %3203 }
0x17c0   :  { %4836 = vrcp.f32 %v3204_v33 }
0x17c3   :  { %v3207_v34 = vpop.xlane.xlu1 %3206 }
0x17c4   :  { %4838 = vrcp.f32 %v3207_v34 }
0x17c7   :  { %v3213_v36 = vpop.permute.xlu1 %3212 }
0x17c8   :  { %4614 = vmatpush3.msra.mxu0 %v3213_v36 }
0x17c9   :  { %4623 = vmatprep.subr.mxu0 %v4203_v35 }
0x17ca   :  { %v4837_v42 = vpop.eup %4836 }
0x17cb   :  { %v3210_v38 = vmul.f32 %v4837_v42, %v4833_v22  ;;  %v3526_v50 = vpop.permute.xlu1 %3525 }
0x17cd   :  { %4616 = vmatmul.mubr.msk.f32.vlgmr.msra.gmra.mrb[34].mxu0 %vm165_vm2, %v3210_v38 }
0x17ce   :  { %v4839_v39 = vpop.eup %4838  ;;  %4624 = vmatpush3.msra.mxu0 %v4203_v35 }
0x17cf   :  { %v3211_v41 = vmul.f32 %v4839_v39, %v4835_v24  ;;  %4633 = vmatprep.subr.mxu0 %v4860_v12 }
0x17d1   :  { %4621 = vmatmul.mubr.msk.f32.vlgmr.msra.gmra.mrb[34].mxu1 %vm165_vm2, %v3211_v41 }
0x17d2   :  { %4629 = vmatpush3.xpose.msk.msra.mxu1 %vm165_vm2, %v3450_v37  ;;  %4630 = vmatprep.mubr.msk.f32.mxu1 %vm4861_vm1, %v4860_v12 }
0x17d3   :  { %4638 = vmatprep.subr.mxu1 %v4860_v12 }
0x17d5   :  { %4631 = vmatmul.mubr.msk.f32.vlgmr.msra.gmra.mrb[36].mxu1 %vm165_vm2, %v3448_v10  ;;  %v4206_v10 = vld [vmem:[%s5510_s4 + $0x28] sm:$0xff] }
0x17d6   :  { %4640 = vmatprep.mubr.msk.f32.mxu1 %vm4861_vm1, %v4860_v12 }
0x18a0   :  { %v3284_v47 = vpop.f32.mrb[34].mxu0 }
0x18a1   :  { %v4617_v43 = vpop.f32.mrb[35].mxu0  ;;  %4625 = vmatprep.mubr.msk.f32.mxu0 %vm165_vm2, %v3284_v47 }
0x18a2   :  { %v4207_v43 = vld [vmem:[%s5510_s4 + $0x30] sm:$0xff] }
0x18a4   :  { %v3360_v46 = vpop.f32.mrb[34].mxu1 }
0x18a5   :  { %v4622_v48 = vpop.f32.mrb[35].mxu1  ;;  %4626 = vmatmul.mubr.msk.f32.vlgmr.msra.gmra.mrb[28].mxu0 %vm165_vm2, %v3360_v46  ;;  %v4208_v46 = vld [vmem:[%s5510_s4 + $0x38] sm:$0xff] }
0x18a6   :  { %4634 = vmatpush3.xpose.msk.msra.mxu0 %vm165_vm2, %v3528_v20  ;;  %4635 = vmatprep.mubr.msk.f32.mxu0 %vm4861_vm1, %v4860_v12  ;;  %v4727_v48 = vpack.c.bf16 %v4208_v46, %v4207_v43 }
0x18a7   :  { %4643 = vmatprep.subr.mxu0 %v4860_v12 }
0x18a8   :  { %v3521_v51 = vpop.f32.mrb[36].mxu1 }
0x18a9   :  { %v4632_v52 = vpop.f32.mrb[37].mxu1  ;;  %4636 = vmatmul.mubr.msk.f32.vlgmr.msra.gmra.mrb[36].mxu0 %vm165_vm2, %v3526_v50  ;;  %v3603_v16 = vsel %vm165_vm2, %v3521_v51, -inf  ;;  %v4209_v50 = vld [vmem:[%s5511_s5 + $0x40] sm:$0xff] }
0x18aa   :  { %3604 = vmax.xlane.f32.xlu0 %v3603_v16  ;;  %4645 = vmatprep.mubr.msk.f32.mxu0 %vm4861_vm1, %v4860_v12  ;;  %v4211_v52 = vld [vmem:[%s5511_s5 + $0x50] sm:$0xff] }
0x1937   :  { %v3605_v54 = vpop.xlane.xlu0 %3604 }
0x1938   :  { %v3609_v55 = vsub.f32 %v3521_v51, %v3605_v54  ;;  %v4210_v51 = vld [vmem:[%s5511_s5 + $0x48] sm:$0xff]  ;;  %v4212_v54 = vld [vmem:[%s5511_s5 + $0x58] sm:$0xff] }
0x1939   :  { %v4731_v16 = vpack.c.bf16 %v4210_v51, %v4209_v50 }
0x193a   :  { %v3611_v56 = vmul.f32 1.442695, %v3609_v55  ;;  %v4735_v55 = vpack.c.bf16 %v4212_v54, %v4211_v52  ;;  %v4103_v52 = vrot.slane %v5417_v17, %v2063_v29 }
0x193c   :  { %4840 = vpow2.f32 %v3611_v56  ;;  %v4213_v56 = vld [vmem:[%s5511_s5 + $0x60] sm:$0xff] }
0x1946   :  { %v4841_v57 = vpop.eup %4840 }
0x1947   :  { %v3615_v58 = vsel %vm165_vm2, %v4841_v57, 0.0 }
0x1948   :  { %3616 = vadd.xlane.f32.xlu0 %v3615_v58 }
0x197c   :  { %v3599_v59 = vpop.f32.mrb[36].mxu0 }
0x197d   :  { %v4637_v60 = vpop.f32.mrb[37].mxu0  ;;  %v3606_v61 = vsel %vm165_vm2, %v3599_v59, -inf }
0x197e   :  { %3607 = vmax.xlane.f32.xlu1 %v3606_v61 }
0x198f   :  { %3625 = vrot.lane.b32.xlu1 %v5268_v49, %s4872_s20 }
0x19d5   :  { %v3617_v62 = vpop.xlane.xlu0 %3616 }
0x19d6   :  { %4842 = vrcp.f32 %v3617_v62 }
0x19e0   :  { %v4843_v12 = vpop.eup %4842 }
0x19e1   :  { %v3623_v9 = vmul.f32 %v4843_v12, %v4841_v57  ;;  %v4214_v57 = vld [vmem:[%s5511_s5 + $0x68] sm:$0xff] }
0x19e2   :  { %v4739_v58 = vpack.c.bf16 %v4214_v57, %v4213_v56  ;;  %v4109_v56 = vrot.slane %v5417_v17, %v2069_v30 }
0x1a0b   :  { %v3608_v21 = vpop.xlane.xlu1 %3607 }
0x1a0c   :  { %v3610_v63 = vsub.f32 %v3599_v59, %v3608_v21 }
0x1a0e   :  { %v3613_v0 = vmul.f32 1.442695, %v3610_v63  ;;  %v3891_v63 = vrot.slane %v5417_v17, %v5171_v25 }
0x1a0f   :  { %v3626_v5 = vpop.permute.xlu1 %3625 }
0x1a10   :  { %4844 = vpow2.f32 %v3613_v0  ;;  %4639 = vmatpush3.msra.mxu1 %v3626_v5 }
0x1a11   :  { %4641 = vmatmul.mubr.msk.f32.vlgmr.msra.gmra.mrb[38].mxu1 %vm165_vm2, %v3623_v9 }
0x1a1a   :  { %v4845_v1 = vpop.eup %4844 }
0x1a1b   :  { %v3618_v45 = vsel %vm165_vm2, %v4845_v1, 0.0 }
0x1a1c   :  { %3619 = vadd.xlane.f32.xlu0 %v3618_v45  ;;  %v3897_v45 = vrot.slane %v5417_v17, %v1856_v26  ;;  %v3903_v26 = vrot.slane %v5254_v7, %v5171_v25 }
0x1a32   :  { %3701 = vrot.lane.b32.xlu0 %v5266_v44, %s4872_s20 }
0x1aa9   :  { %v3620_v49 = vpop.xlane.xlu0 %3619 }
0x1aaa   :  { %4846 = vrcp.f32 %v3620_v49 }
0x1aad   :  { %v3702_v3 = vpop.permute.xlu0 %3701 }
0x1aae   :  { %4644 = vmatpush3.msra.mxu0 %v3702_v3 }
0x1aaf   :  { %4648 = vmatprep.subr.mxu0 %v4204_v2 }
0x1ab4   :  { %v4847_v4 = vpop.eup %4846 }
0x1ab5   :  { %v3624_v6 = vmul.f32 %v4847_v4, %v4845_v1 }
0x1ab7   :  { %4646 = vmatmul.mubr.msk.f32.vlgmr.msra.gmra.mrb[38].mxu0 %vm165_vm2, %v3624_v6  ;;  %v4215_v6 = vld [vmem:[%s5511_s5 + $0x70] sm:$0xff] }
0x1ab8   :  { %4649 = vmatpush3.msra.mxu0 %v4204_v2 }
0x1ab9   :  { %4732 = vmatprep.subr.bf16.mxu0 %v4731_v16 }
0x1ae4   :  { %v3697_v8 = vpop.f32.mrb[38].mxu1 }
0x1ae5   :  { %v4642_v11 = vpop.f32.mrb[39].mxu1  ;;  %4650 = vmatprep.mubr.msk.f32.mxu0 %vm165_vm2, %v3697_v8  ;;  %v4216_v8 = vld [vmem:[%s5511_s5 + $0x78] sm:$0xff] }
0x1ae6   :  { %v4743_v11 = vpack.c.bf16 %v4216_v8, %v4215_v6  ;;  %v4112_v8 = vld [vmem:[%s5512_s8] sm:$0x3] }
0x1b8a   :  { %v3773_v13 = vpop.f32.mrb[38].mxu0 }
0x1b8b   :  { %v4647_v44 = vpop.f32.mrb[39].mxu0  ;;  %4651 = vmatmul.mubr.msk.f32.vlgmr.msra.gmra.mrb[28].mxu0 %vm165_vm2, %v3773_v13 }
0x1b8c   :  { %4734 = vmatpush3.bf16.msra.mxu0 %v4731_v16 }
0x1b8d   :  { %4736 = vmatprep.subr.bf16.mxu0 %v4735_v55 }
0x1b90   :  { %4738 = vmatpush3.bf16.msra.mxu0 %v4735_v55 }
0x1b91   :  { %4740 = vmatprep.subr.bf16.mxu0 %v4739_v58 }
0x1b94   :  { %4742 = vmatpush3.bf16.msra.mxu0 %v4739_v58 }
0x1b95   :  { %4744 = vmatprep.subr.bf16.mxu0 %v4743_v11 }
0x1b98   :  { %4746 = vmatpush3.bf16.msra.mxu0 %v4743_v11  ;;  %v4142_v11 = vrot.slane %v4112_v8, %v4974_v15 }
0x1c5e   :  { %v4652_v19 = vpop.f32.mrb[28].mxu0 }
0x1c5f   :  { %v4749_v22 = vadd.f32 %v4652_v19, %v2618_v18  ;;  %v3849_v23 = vpop.f32.mrb[29].mxu0 }
0x1c60   :  { %v4750_v24 = vadd.f32 %v3849_v23, %v2618_v18 }
0x1c61   :  { %v3861_v27 = vadd.f32 %v4749_v22, %v5235_v32 }
0x1c62   :  { %v3860_v28 = vadd.f32 %v4750_v24, %v5237_v40  ;;  %v4205_v40 = vld [vmem:[%s5510_s4 + $0x20] sm:$0xff]  ;;  %v3990_v24 = vrot.slane %v5417_v17, %v1949_v53 }
0x1c63   :  { %v3865_v31 = vsel %vm64_vm0, %v3861_v27, 0.0  ;;  %v4723_v47 = vpack.c.bf16 %v4206_v10, %v4205_v40 }
0x1c64   :  { %3866 = vadd.xlane.f32.xlu0 %v3865_v31  ;;  %v3862_v33 = vsel %vm64_vm0, %v3860_v28, 0.0 }
0x1c65   :  { %3863 = vadd.xlane.f32.xlu1 %v3862_v33  ;;  %4724 = vmatprep.subr.bf16.mxu1 %v4723_v47 }
0x1c66   :  { %4726 = vmatpush3.bf16.msra.mxu1 %v4723_v47 }
0x1c67   :  { %4728 = vmatprep.subr.bf16.mxu1 %v4727_v48 }
0x1c6a   :  { %4730 = vmatpush3.bf16.msra.mxu1 %v4727_v48 }
0x1cf1   :  { %v3867_v34 = vpop.xlane.xlu0 %3866 }
0x1cf2   :  { %v3869_v35 = vmul.f32 0.03125, %v3867_v34  ;;  %v3864_v36 = vpop.xlane.xlu1 %3863 }
0x1cf3   :  { %v3868_v37 = vmul.f32 0.03125, %v3864_v36 }
0x1cf4   :  { %v3871_v42 = vsub.f32 %v3861_v27, %v3869_v35 }
0x1cf5   :  { %v3870_v38 = vsub.f32 %v3860_v28, %v3868_v37 }
0x1cf6   :  { %v3873_v39 = vmul.f32 %v3871_v42, %v3871_v42 }
0x1cf7   :  { %v3872_v20 = vmul.f32 %v3870_v38, %v3870_v38 }
0x1cf8   :  { %v3877_v41 = vsel %vm64_vm0, %v3873_v39, 0.0 }
0x1cf9   :  { %3878 = vadd.xlane.f32.xlu0 %v3877_v41  ;;  %v3874_v32 = vsel %vm64_vm0, %v3872_v20, 0.0 }
0x1cfa   :  { %3875 = vadd.xlane.f32.xlu1 %v3874_v32 }
0x1d86   :  { %v3879_v59 = vpop.xlane.xlu0 %3878 }
0x1d87   :  { %v3881_v60 = vmul.f32 0.03125, %v3879_v59  ;;  %v3876_v61 = vpop.xlane.xlu1 %3875 }
0x1d88   :  { %v3880_v62 = vmul.f32 0.03125, %v3876_v61 }
0x1d89   :  { %v3883_v21 = vadd.f32 1e-05, %v3881_v60 }
0x1d8a   :  { %v3882_v12 = vadd.f32 1e-05, %v3880_v62 }
0x1d8b   :  { %4848 = vrsqrt.f32 %v3883_v21 }
0x1d8c   :  { %4850 = vrsqrt.f32 %v3882_v12 }
0x1d95   :  { %v4849_v0 = vpop.eup %4848 }
0x1d96   :  { %v4851_v9 = vpop.eup %4850  ;;  %v3887_v5 = vmul.f32 %v4849_v0, %v3871_v42 }
0x1d97   :  { %v3886_v1 = vmul.f32 %v4851_v9, %v3870_v38 }
0x1d98   :  { %v3893_v49 = vmul.f32 %v3891_v63, %v3887_v5 }
0x1d99   :  { %v3892_v2 = vmul.f32 %v3891_v63, %v3886_v1 }
0x1d9a   :  { %v3899_v4 = vadd.f32 %v3897_v45, %v3893_v49 }
0x1d9b   :  { %v3898_v3 = vadd.f32 %v3897_v45, %v3892_v2 }
0x1d9d   :  { %4661 = vmatprep.mubr.msk.f32.mxu1 %vm64_vm0, %v3898_v3 }
0x1d9e   :  { %4662 = vmatmul.mubr.msk.f32.vlgmr.msra.gmra.mrb[40].mxu1 %vm64_vm0, %v3899_v4 }
0x1e71   :  { %v4663_v13 = vpop.f32.mrb[40].mxu1 }
0x1e72   :  { %v3982_v44 = vadd.f32 %v4663_v13, %v3903_v26  ;;  %v3976_v18 = vpop.f32.mrb[41].mxu1 }
0x1e73   :  { %v3977_v19 = vadd.f32 %v3976_v18, %v3903_v26 }
0x1e74   :  { %v3986_v23 = vmax.f32 %v3982_v44, 0.0  ;;  %v4148_v44 = vrot.slane %v4112_v8, %v5171_v25 }
0x1e75   :  { %v3985_v22 = vmax.f32 %v3977_v19, 0.0 }
0x1e77   :  { %4680 = vmatprep.mubr.msk.f32.mxu0 %vm1951_vm3, %v3985_v22 }
0x1e78   :  { %4681 = vmatmul.mubr.msk.f32.vlgmr.msra.gmra.mrb[40].mxu0 %vm1951_vm3, %v3986_v23 }
0x1f4b   :  { %v4682_v27 = vpop.f32.mrb[40].mxu0 }
0x1f4c   :  { %v4069_v28 = vadd.f32 %v4682_v27, %v3990_v24  ;;  %v4063_v31 = vpop.f32.mrb[41].mxu0 }
0x1f4d   :  { %v4064_v33 = vadd.f32 %v4063_v31, %v3990_v24 }
0x1f4e   :  { %v4073_v34 = vadd.f32 %v4069_v28, %v3899_v4 }
0x1f4f   :  { %v4072_v7 = vadd.f32 %v4064_v33, %v3898_v3 }
0x1f50   :  { %v4077_v35 = vsel %vm64_vm0, %v4073_v34, 0.0 }
0x1f51   :  { %4078 = vadd.xlane.f32.xlu0 %v4077_v35  ;;  %v4074_v36 = vsel %vm64_vm0, %v4072_v7, 0.0 }
0x1f52   :  { %4075 = vadd.xlane.f32.xlu1 %v4074_v36 }
0x1fde   :  { %v4079_v37 = vpop.xlane.xlu0 %4078 }
0x1fdf   :  { %v4081_v42 = vmul.f32 0.03125, %v4079_v37  ;;  %v4076_v38 = vpop.xlane.xlu1 %4075 }
0x1fe0   :  { %v4080_v39 = vmul.f32 0.03125, %v4076_v38 }
0x1fe1   :  { %v4083_v20 = vsub.f32 %v4073_v34, %v4081_v42 }
0x1fe2   :  { %v4082_v41 = vsub.f32 %v4072_v7, %v4080_v39 }
0x1fe3   :  { %v4085_v32 = vmul.f32 %v4083_v20, %v4083_v20 }
0x1fe4   :  { %v4084_v53 = vmul.f32 %v4082_v41, %v4082_v41 }
0x1fe5   :  { %v4089_v40 = vsel %vm64_vm0, %v4085_v32, 0.0 }
0x1fe6   :  { %4090 = vadd.xlane.f32.xlu0 %v4089_v40  ;;  %v4086_v10 = vsel %vm64_vm0, %v4084_v53, 0.0 }
0x1fe7   :  { %4087 = vadd.xlane.f32.xlu1 %v4086_v10 }
0x2073   :  { %v4091_v47 = vpop.xlane.xlu0 %4090 }
0x2074   :  { %v4093_v43 = vmul.f32 0.03125, %v4091_v47  ;;  %v4088_v46 = vpop.xlane.xlu1 %4087 }
0x2075   :  { %v4092_v48 = vmul.f32 0.03125, %v4088_v46 }
0x2076   :  { %v4095_v50 = vadd.f32 1e-05, %v4093_v43 }
0x2077   :  { %v4094_v51 = vadd.f32 1e-05, %v4092_v48 }
0x2078   :  { %4852 = vrsqrt.f32 %v4095_v50 }
0x2079   :  { %4854 = vrsqrt.f32 %v4094_v51 }
0x2082   :  { %v4853_v16 = vpop.eup %4852 }
0x2083   :  { %v4855_v54 = vpop.eup %4854  ;;  %v4099_v55 = vmul.f32 %v4853_v16, %v4083_v20 }
0x2084   :  { %v4098_v57 = vmul.f32 %v4855_v54, %v4082_v41 }
0x2085   :  { %v4105_v58 = vmul.f32 %v4103_v52, %v4099_v55 }
0x2086   :  { %v4104_v59 = vmul.f32 %v4103_v52, %v4098_v57 }
0x2087   :  { %v4111_v60 = vadd.f32 %v4109_v56, %v4105_v58 }
0x2088   :  { %v4110_v61 = vadd.f32 %v4109_v56, %v4104_v59 }
0x2089   :  { %v4116_v62 = vsel %vm64_vm0, %v4111_v60, 0.0 }
0x208a   :  { %4117 = vadd.xlane.f32.xlu0 %v4116_v62  ;;  %v4113_v21 = vsel %vm64_vm0, %v4110_v61, 0.0 }
0x208b   :  { %4114 = vadd.xlane.f32.xlu1 %v4113_v21 }
0x2117   :  { %v4118_v12 = vpop.xlane.xlu0 %4117 }
0x2118   :  { %v4120_v29 = vmul.f32 0.03125, %v4118_v12  ;;  %v4115_v63 = vpop.xlane.xlu1 %4114 }
0x2119   :  { %v4119_v0 = vmul.f32 0.03125, %v4115_v63 }
0x211a   :  { %v4122_v9 = vsub.f32 %v4111_v60, %v4120_v29 }
0x211b   :  { %v4121_v5 = vsub.f32 %v4110_v61, %v4119_v0 }
0x211c   :  { %v4124_v14 = vmul.f32 %v4122_v9, %v4122_v9 }
0x211d   :  { %v4123_v1 = vmul.f32 %v4121_v5, %v4121_v5 }
0x211e   :  { %v4128_v30 = vsel %vm64_vm0, %v4124_v14, 0.0 }
0x211f   :  { %4129 = vadd.xlane.f32.xlu0 %v4128_v30  ;;  %v4125_v17 = vsel %vm64_vm0, %v4123_v1, 0.0 }
0x2120   :  { %4126 = vadd.xlane.f32.xlu1 %v4125_v17 }
0x21ac   :  { %v4130_v45 = vpop.xlane.xlu0 %4129 }
0x21ad   :  { %v4132_v49 = vmul.f32 0.03125, %v4130_v45  ;;  %v4127_v2 = vpop.xlane.xlu1 %4126 }
0x21ae   :  { %v4131_v3 = vmul.f32 0.03125, %v4127_v2 }
0x21af   :  { %v4134_v4 = vadd.f32 1e-05, %v4132_v49 }
0x21b0   :  { %v4133_v6 = vadd.f32 1e-05, %v4131_v3 }
0x21b1   :  { %4856 = vrsqrt.f32 %v4134_v4 }
0x21b2   :  { %4858 = vrsqrt.f32 %v4133_v6 }
0x21bb   :  { %v4857_v26 = vpop.eup %4856 }
0x21bc   :  { %v4859_v13 = vpop.eup %4858  ;;  %v4138_v18 = vmul.f32 %v4857_v26, %v4122_v9 }
0x21bd   :  { %v4137_v19 = vmul.f32 %v4859_v13, %v4121_v5 }
0x21be   :  { %v4144_v22 = vmul.f32 %v4142_v11, %v4138_v18 }
0x21bf   :  { %v4143_v23 = vmul.f32 %v4142_v11, %v4137_v19 }
0x21c0   :  { %v4150_v24 = vadd.f32 %v4148_v44, %v4144_v22 }
0x21c1   :  { %v4149_v27 = vadd.f32 %v4148_v44, %v4143_v23 }
0x21c2   :  { %4152 = vst.msk [vmem:[%s5513_s9 + $0x8] sm:$0xff] %vm64_vm0, %v4150_v24 }
0x21c3   :  { %4151 = vst.msk [vmem:[%s5513_s9] sm:$0xff] %vm64_vm0, %v4149_v27 }

</bundles_post_ra>
